<compile_context>
chip_gen: v7x
topology: tpu7x:2x2x1
jax: 0.10.0
libtpu: 0.0.40
codegen_flags: <defaults>
</compile_context>

<pallas_src>
import functools

import jax
import jax.numpy as jnp
import numpy as np
from jax import lax
from jax.experimental import pallas as pl
from jax.experimental.pallas import tpu as pltpu


def _layernorm(x, gamma, beta, eps=1e-5):
    mu = jnp.mean(x, axis=-1, keepdims=True)
    var = jnp.mean((x - mu) ** 2, axis=-1, keepdims=True)
    return (x - mu) * lax.rsqrt(var + eps) * gamma + beta


def decoder_kernel(
    x_ref,        # (1, S, E)  per-batch hidden-state tile
    mask_ref,     # (H*S, H*S) block-diagonal per-head additive mask
    wqkv_ref,     # (L, E, 3E) fused QKV weights (Q columns pre-scaled)
    wo_ref,       # (L, E, E)
    w1_ref,       # (L, E, F)
    w2_ref,       # (L, F, E)
    vec_ref,      # (L, 8, 128) packed small per-layer params
    lm_w_ref,     # (E, V)
    o_ref,        # (1, S, V)
    *, num_layers, num_heads, embed_dim, ff_dim,
):
    E, F, H = embed_dim, ff_dim, num_heads
    dh = E // H
    S = x_ref.shape[1]

    h = x_ref[0]                    # (S, E) f32, carried as a value across layers
    mask = mask_ref[...]            # (H*S, H*S) additive mask, loaded once

    for l in range(num_layers):     # static unrolled layer loop, all weights VMEM-resident
        vec = vec_ref[l]            # (8, 128)
        b_qkv = vec[0:1, 0:3 * E]   # (1, 3E)   Q part already pre-scaled
        b_o   = vec[1:2, 0:E]
        g1    = vec[2:3, 0:E]
        bt1   = vec[3:4, 0:E]
        b_1   = vec[4:5, 0:F]
        b_2   = vec[5:6, 0:E]
        g2    = vec[6:7, 0:E]
        bt2   = vec[7:8, 0:E]

        # ---- fused QKV projection: one MXU push ----
        qkv = jnp.dot(h, wqkv_ref[l], preferred_element_type=jnp.float32) + b_qkv  # (S, 3E)
        q = qkv[:, 0:E]             # already scaled by 1/sqrt(dh) via the weights
        k = qkv[:, E:2 * E]
        v = qkv[:, 2 * E:3 * E]

        # ---- head-batched attention: (H*S, dh) operands, one score/softmax/context pass ----
        q_f = jnp.concatenate([q[:, hd * dh:(hd + 1) * dh] for hd in range(H)], axis=0)
        k_f = jnp.concatenate([k[:, hd * dh:(hd + 1) * dh] for hd in range(H)], axis=0)
        v_f = jnp.concatenate([v[:, hd * dh:(hd + 1) * dh] for hd in range(H)], axis=0)

        s = lax.dot_general(q_f, k_f, (((1,), (1,)), ((), ())),
                            preferred_element_type=jnp.float32) + mask            # (H*S, H*S)
        s = s - jnp.max(s, axis=-1, keepdims=True)
        p = jnp.exp(s)
        p = p * pl.reciprocal(jnp.sum(p, axis=-1, keepdims=True), approx=True)
        ctx_f = jnp.dot(p, v_f, preferred_element_type=jnp.float32)               # (H*S, dh)
        ctx = jnp.concatenate([ctx_f[hd * S:(hd + 1) * S, :] for hd in range(H)], axis=1)

        attn = jnp.dot(ctx, wo_ref[l], preferred_element_type=jnp.float32) + b_o
        h1 = _layernorm(h + attn, g1, bt1)     # residual + post-LN (dropout == identity, eval)

        # ---- feed-forward ----
        ff = jnp.dot(h1, w1_ref[l], preferred_element_type=jnp.float32) + b_1
        ff = jnp.maximum(ff, 0.0)              # TODO(synk): assumed ReLU activation
        ff = jnp.dot(ff, w2_ref[l], preferred_element_type=jnp.float32) + b_2
        h = _layernorm(h1 + ff, g2, bt2)

    # ---- LM head + log_softmax (exact), single lane-dense (S, V=128) store ----
    logits = jnp.dot(h, lm_w_ref[...], preferred_element_type=jnp.float32)        # (S, V)
    z = logits - jnp.max(logits, axis=-1, keepdims=True)
    lse = jnp.log(jnp.sum(jnp.exp(z), axis=-1, keepdims=True))
    o_ref[0] = (z - lse).astype(o_ref.dtype)


def decoder_for_generation(hidden_states, attention_mask, stacked, lm_w, num_heads):
    """Single pallas_call fusing the whole DecoderForGeneration forward pass."""
    B, S, E = hidden_states.shape
    L, _, F = stacked["w1"].shape
    V = lm_w.shape[-1]
    H = num_heads

    # Block-diagonal per-head additive mask (built once per call in the wrapper): within a
    # head's (S,S) block use the user-supplied additive mask; across heads mask out with -1e9.
    blk = np.kron(np.eye(H, dtype=np.float32), np.ones((S, S), np.float32))   # host constant
    mask_big = jnp.where(blk > 0, jnp.tile(attention_mask, (H, H)), jnp.float32(-1e9))

    def full_spec(arr):
        nd = arr.ndim
        return pl.BlockSpec(arr.shape, lambda b, _n=nd: (0,) * _n)   # constant block -> 1 DMA

    kernel = functools.partial(decoder_kernel, num_layers=L, num_heads=H,
                               embed_dim=E, ff_dim=F)

    return pl.pallas_call(
        kernel,
        out_shape=jax.ShapeDtypeStruct((B, S, V), jnp.float32),
        grid_spec=pltpu.PrefetchScalarGridSpec(
            num_scalar_prefetch=0,
            grid=(B,),                                       # batch only; layers fused in-kernel
            in_specs=[pl.BlockSpec((1, S, E), lambda b: (b, 0, 0)),
                      full_spec(mask_big),
                      full_spec(stacked["wqkv"]),
                      full_spec(stacked["wo"]),
                      full_spec(stacked["w1"]),
                      full_spec(stacked["w2"]),
                      full_spec(stacked["vec"]),
                      full_spec(lm_w)],
            out_specs=pl.BlockSpec((1, S, V), lambda b: (b, 0, 0)),
        ),
        compiler_params=pltpu.CompilerParams(
            dimension_semantics=("parallel",)),              # 2-wide parallel axis -> both v7x TCs
    )(hidden_states, mask_big, stacked["wqkv"], stacked["wo"],
      stacked["w1"], stacked["w2"], stacked["vec"], lm_w)


# ------------------------- pure-JAX reference (for sanity) -------------------------
def _ref_block(x, mask, p, num_heads):
    B, S, E = x.shape
    dh = E // num_heads
    scale = 1.0 / float(dh) ** 0.5
    q = x @ p["wq"] + p["bq"]
    k = x @ p["wk"] + p["bk"]
    v = x @ p["wv"] + p["bv"]
    q = q.reshape(B, S, num_heads, dh).transpose(0, 2, 1, 3)
    k = k.reshape(B, S, num_heads, dh).transpose(0, 2, 1, 3)
    v = v.reshape(B, S, num_heads, dh).transpose(0, 2, 1, 3)
    s = jnp.einsum("bhqd,bhkd->bhqk", q, k) * scale + mask[None, None]
    a = jax.nn.softmax(s, axis=-1)
    ctx = jnp.einsum("bhqk,bhkd->bhqd", a, v).transpose(0, 2, 1, 3).reshape(B, S, E)
    attn = ctx @ p["wo"] + p["bo"]
    h1 = _layernorm(x + attn, p["ln1_g"], p["ln1_b"])
    ff = jnp.maximum(h1 @ p["w1"] + p["b1"], 0.0) @ p["w2"] + p["b2"]
    return _layernorm(h1 + ff, p["ln2_g"], p["ln2_b"])


def _ref_forward(x, mask, layer_params, lm_w, num_heads):
    for p in layer_params:
        x = _ref_block(x, mask, p, num_heads)
    # pre_layernorm=False -> no final LayerNorm
    return jax.nn.log_softmax(x @ lm_w, axis=-1)


# ------------------------------- parameter init / packing --------------------------
def init_block_params(key, E, F):
    ks = jax.random.split(key, 6)

    def w(k, shape):
        return 0.02 * jax.random.normal(k, shape, dtype=jnp.float32)

    return dict(
        wq=w(ks[0], (E, E)), bq=jnp.zeros((1, E), jnp.float32),
        wk=w(ks[1], (E, E)), bk=jnp.zeros((1, E), jnp.float32),
        wv=w(ks[2], (E, E)), bv=jnp.zeros((1, E), jnp.float32),
        wo=w(ks[3], (E, E)), bo=jnp.zeros((1, E), jnp.float32),
        ln1_g=jnp.ones((1, E), jnp.float32), ln1_b=jnp.zeros((1, E), jnp.float32),
        w1=w(ks[4], (E, F)), b1=jnp.zeros((1, F), jnp.float32),
        w2=w(ks[5], (F, E)), b2=jnp.zeros((1, E), jnp.float32),
        ln2_g=jnp.ones((1, E), jnp.float32), ln2_b=jnp.zeros((1, E), jnp.float32),
    )


def stack_layer_params(layer_params, num_heads):
    """Fuse QKV (scale folded into Q), stack along L, and pack small vectors into one slab."""
    E = layer_params[0]["wq"].shape[0]
    F = layer_params[0]["w1"].shape[1]
    dh = E // num_heads
    scale = 1.0 / float(dh) ** 0.5

    wqkv = jnp.stack([jnp.concatenate([p["wq"] * scale, p["wk"], p["wv"]], axis=1)
                      for p in layer_params])                        # (L, E, 3E)
    wo = jnp.stack([p["wo"] for p in layer_params])                  # (L, E, E)
    w1 = jnp.stack([p["w1"] for p in layer_params])                  # (L, E, F)
    w2 = jnp.stack([p["w2"] for p in layer_params])                  # (L, F, E)

    def row(v, width=128):
        v = v.reshape(-1)
        return jnp.pad(v, (0, width - v.shape[0]))

    vec = jnp.stack([
        jnp.stack([
            row(jnp.concatenate([p["bq"].reshape(-1) * scale,
                                 p["bk"].reshape(-1), p["bv"].reshape(-1)])),  # row 0: bqkv
            row(p["bo"]),                                                       # row 1
            row(p["ln1_g"]), row(p["ln1_b"]),                                   # rows 2,3
            row(p["b1"]),                                                       # row 4
            row(p["b2"]),                                                       # row 5
            row(p["ln2_g"]), row(p["ln2_b"]),                                   # rows 6,7
        ]) for p in layer_params])                                   # (L, 8, 128)

    return dict(wqkv=wqkv, wo=wo, w1=w1, w2=w2, vec=vec)


if __name__ == "__main__":
    VOCAB_SIZE, NUM_STACKS, EMBED_DIM, NUM_HEADS, FF_DIM = 128, 2, 32, 4, 64
    B, S = 2, 8

    root = jax.random.PRNGKey(0)
    k_x, k_params, k_lm = jax.random.split(root, 3)
    hidden_states = jax.random.normal(k_x, (B, S, EMBED_DIM), dtype=jnp.float32)

    # Causal additive attention mask (0 allowed, -1e9 masked).
    causal = jnp.tril(jnp.ones((S, S), dtype=jnp.float32))
    attention_mask = jnp.where(causal > 0, 0.0, -1e9).astype(jnp.float32)

    layer_params = [init_block_params(k, EMBED_DIM, FF_DIM)
                    for k in jax.random.split(k_params, NUM_STACKS)]
    lm_head_w = 0.02 * jax.random.normal(k_lm, (EMBED_DIM, VOCAB_SIZE), dtype=jnp.float32)

    stacked = stack_layer_params(layer_params, NUM_HEADS)

    out = decoder_for_generation(hidden_states, attention_mask, stacked, lm_head_w, NUM_HEADS)
    out = jax.block_until_ready(out)

    ref = _ref_forward(hidden_states, attention_mask, layer_params, lm_head_w, NUM_HEADS)
    np.testing.assert_allclose(np.asarray(out), np.asarray(ref), rtol=2e-4, atol=2e-4)

    print("KERNEL_OK")
</pallas_src>

<mosaic_0001>
module attributes {stable_mosaic.version = 11 : i64} {
  func.func @decoder_kernel(%arg0: i32, %arg1: memref<1x8x32xf32, #tpu.memory_space<vmem>>, %arg2: memref<32x32xf32, #tpu.memory_space<vmem>>, %arg3: memref<2x32x96xf32, #tpu.memory_space<vmem>>, %arg4: memref<2x32x32xf32, #tpu.memory_space<vmem>>, %arg5: memref<2x32x64xf32, #tpu.memory_space<vmem>>, %arg6: memref<2x64x32xf32, #tpu.memory_space<vmem>>, %arg7: memref<2x8x128xf32, #tpu.memory_space<vmem>>, %arg8: memref<32x128xf32, #tpu.memory_space<vmem>>, %arg9: memref<1x8x128xf32, #tpu.memory_space<vmem>>) attributes {dimension_semantics = [#tpu.dimension_semantics<parallel>], iteration_bounds = array<i64: 2>, scalar_prefetch = 0 : i64, scratch_operands = 0 : i64, tpu.core_type = #tpu.core_type<tc>, window_params = [{transform_indices = @transform_0, window_bounds = array<i64: 1, 8, 32>}, {pipeline_mode = #tpu.pipeline_mode<synchronous>, transform_indices = @transform_1, window_bounds = array<i64: 32, 32>}, {pipeline_mode = #tpu.pipeline_mode<synchronous>, transform_indices = @transform_2, window_bounds = array<i64: 2, 32, 96>}, {pipeline_mode = #tpu.pipeline_mode<synchronous>, transform_indices = @transform_3, window_bounds = array<i64: 2, 32, 32>}, {pipeline_mode = #tpu.pipeline_mode<synchronous>, transform_indices = @transform_4, window_bounds = array<i64: 2, 32, 64>}, {pipeline_mode = #tpu.pipeline_mode<synchronous>, transform_indices = @transform_5, window_bounds = array<i64: 2, 64, 32>}, {pipeline_mode = #tpu.pipeline_mode<synchronous>, transform_indices = @transform_6, window_bounds = array<i64: 2, 8, 128>}, {pipeline_mode = #tpu.pipeline_mode<synchronous>, transform_indices = @transform_7, window_bounds = array<i64: 32, 128>}, {transform_indices = @transform_8, window_bounds = array<i64: 1, 8, 128>}]} {
    %c0 = arith.constant 0 : index
    %c0_0 = arith.constant 0 : index
    %c0_1 = arith.constant 0 : index
    %0 = vector.load %arg1[%c0, %c0_0, %c0_1] : memref<1x8x32xf32, #tpu.memory_space<vmem>>, vector<1x8x32xf32>
    %1 = vector.shape_cast %0 : vector<1x8x32xf32> to vector<8x32xf32>
    %c0_2 = arith.constant 0 : index
    %c0_3 = arith.constant 0 : index
    %2 = vector.load %arg2[%c0_2, %c0_3] : memref<32x32xf32, #tpu.memory_space<vmem>>, vector<32x32xf32>
    %c0_4 = arith.constant 0 : index
    %c0_5 = arith.constant 0 : index
    %c0_6 = arith.constant 0 : index
    %3 = vector.load %arg7[%c0_4, %c0_5, %c0_6] : memref<2x8x128xf32, #tpu.memory_space<vmem>>, vector<1x8x128xf32>
    %4 = vector.shape_cast %3 : vector<1x8x128xf32> to vector<8x128xf32>
    %5 = vector.extract_strided_slice %4 {offsets = [0, 0], sizes = [1, 96], strides = [1, 1]} : vector<8x128xf32> to vector<1x96xf32>
    %6 = vector.extract_strided_slice %4 {offsets = [1, 0], sizes = [1, 32], strides = [1, 1]} : vector<8x128xf32> to vector<1x32xf32>
    %7 = vector.extract_strided_slice %4 {offsets = [2, 0], sizes = [1, 32], strides = [1, 1]} : vector<8x128xf32> to vector<1x32xf32>
    %8 = vector.extract_strided_slice %4 {offsets = [3, 0], sizes = [1, 32], strides = [1, 1]} : vector<8x128xf32> to vector<1x32xf32>
    %9 = vector.extract_strided_slice %4 {offsets = [4, 0], sizes = [1, 64], strides = [1, 1]} : vector<8x128xf32> to vector<1x64xf32>
    %10 = vector.extract_strided_slice %4 {offsets = [5, 0], sizes = [1, 32], strides = [1, 1]} : vector<8x128xf32> to vector<1x32xf32>
    %11 = vector.extract_strided_slice %4 {offsets = [6, 0], sizes = [1, 32], strides = [1, 1]} : vector<8x128xf32> to vector<1x32xf32>
    %12 = vector.extract_strided_slice %4 {offsets = [7, 0], sizes = [1, 32], strides = [1, 1]} : vector<8x128xf32> to vector<1x32xf32>
    %c0_7 = arith.constant 0 : index
    %c0_8 = arith.constant 0 : index
    %c0_9 = arith.constant 0 : index
    %13 = vector.load %arg3[%c0_7, %c0_8, %c0_9] : memref<2x32x96xf32, #tpu.memory_space<vmem>>, vector<1x32x96xf32>
    %14 = vector.shape_cast %13 : vector<1x32x96xf32> to vector<32x96xf32>
    %cst = arith.constant dense<0.000000e+00> : vector<8x96xf32>
    %15 = tpu.matmul %1, %14, %cst {dimension_numbers = #tpu.dot_dimension_numbers<[1], [0], [0], [1], [0, 0, 1, 1], [], []>} : vector<8x32xf32>, vector<32x96xf32>, vector<8x96xf32> -> vector<8x96xf32>
    %16 = vector.broadcast %5 : vector<1x96xf32> to vector<8x96xf32>
    %17 = arith.addf %15, %16 : vector<8x96xf32>
    %18 = vector.extract_strided_slice %17 {offsets = [0, 0], sizes = [8, 32], strides = [1, 1]} : vector<8x96xf32> to vector<8x32xf32>
    %19 = vector.extract_strided_slice %17 {offsets = [0, 32], sizes = [8, 32], strides = [1, 1]} : vector<8x96xf32> to vector<8x32xf32>
    %20 = vector.extract_strided_slice %17 {offsets = [0, 64], sizes = [8, 32], strides = [1, 1]} : vector<8x96xf32> to vector<8x32xf32>
    %21 = vector.extract_strided_slice %18 {offsets = [0, 0], sizes = [8, 8], strides = [1, 1]} : vector<8x32xf32> to vector<8x8xf32>
    %22 = vector.extract_strided_slice %18 {offsets = [0, 8], sizes = [8, 8], strides = [1, 1]} : vector<8x32xf32> to vector<8x8xf32>
    %23 = vector.extract_strided_slice %18 {offsets = [0, 16], sizes = [8, 8], strides = [1, 1]} : vector<8x32xf32> to vector<8x8xf32>
    %24 = vector.extract_strided_slice %18 {offsets = [0, 24], sizes = [8, 8], strides = [1, 1]} : vector<8x32xf32> to vector<8x8xf32>
    %25 = tpu.concatenate %21, %22, %23, %24 in 0 : vector<8x8xf32>, vector<8x8xf32>, vector<8x8xf32>, vector<8x8xf32> -> vector<32x8xf32>
    %26 = vector.extract_strided_slice %19 {offsets = [0, 0], sizes = [8, 8], strides = [1, 1]} : vector<8x32xf32> to vector<8x8xf32>
    %27 = vector.extract_strided_slice %19 {offsets = [0, 8], sizes = [8, 8], strides = [1, 1]} : vector<8x32xf32> to vector<8x8xf32>
    %28 = vector.extract_strided_slice %19 {offsets = [0, 16], sizes = [8, 8], strides = [1, 1]} : vector<8x32xf32> to vector<8x8xf32>
    %29 = vector.extract_strided_slice %19 {offsets = [0, 24], sizes = [8, 8], strides = [1, 1]} : vector<8x32xf32> to vector<8x8xf32>
    %30 = tpu.concatenate %26, %27, %28, %29 in 0 : vector<8x8xf32>, vector<8x8xf32>, vector<8x8xf32>, vector<8x8xf32> -> vector<32x8xf32>
    %31 = vector.extract_strided_slice %20 {offsets = [0, 0], sizes = [8, 8], strides = [1, 1]} : vector<8x32xf32> to vector<8x8xf32>
    %32 = vector.extract_strided_slice %20 {offsets = [0, 8], sizes = [8, 8], strides = [1, 1]} : vector<8x32xf32> to vector<8x8xf32>
    %33 = vector.extract_strided_slice %20 {offsets = [0, 16], sizes = [8, 8], strides = [1, 1]} : vector<8x32xf32> to vector<8x8xf32>
    %34 = vector.extract_strided_slice %20 {offsets = [0, 24], sizes = [8, 8], strides = [1, 1]} : vector<8x32xf32> to vector<8x8xf32>
    %35 = tpu.concatenate %31, %32, %33, %34 in 0 : vector<8x8xf32>, vector<8x8xf32>, vector<8x8xf32>, vector<8x8xf32> -> vector<32x8xf32>
    %cst_10 = arith.constant dense<0.000000e+00> : vector<32x32xf32>
    %36 = tpu.matmul %25, %30, %cst_10 {dimension_numbers = #tpu.dot_dimension_numbers<[1], [1], [0], [0], [0, 0, 1, 0], [], []>} : vector<32x8xf32>, vector<32x8xf32>, vector<32x32xf32> -> vector<32x32xf32>
    %37 = arith.addf %36, %2 : vector<32x32xf32>
    %cst_11 = arith.constant dense<0xFF800000> : vector<32xf32>
    %38 = vector.multi_reduction <maximumf>, %37, %cst_11 [1] : vector<32x32xf32> to vector<32xf32>
    %39 = vector.shape_cast %38 : vector<32xf32> to vector<32x1xf32>
    %40 = vector.broadcast %39 : vector<32x1xf32> to vector<32x32xf32>
    %41 = arith.subf %37, %40 : vector<32x32xf32>
    %42 = math.exp %41 : vector<32x32xf32>
    %cst_12 = arith.constant dense<0.000000e+00> : vector<32xf32>
    %43 = vector.multi_reduction <add>, %42, %cst_12 [1] : vector<32x32xf32> to vector<32xf32>
    %44 = vector.shape_cast %43 : vector<32xf32> to vector<32x1xf32>
    %45 = tpu.reciprocal %44 {approx = true} : vector<32x1xf32> -> vector<32x1xf32>
    %46 = vector.broadcast %45 : vector<32x1xf32> to vector<32x32xf32>
    %47 = arith.mulf %42, %46 : vector<32x32xf32>
    %cst_13 = arith.constant dense<0.000000e+00> : vector<32x8xf32>
    %48 = tpu.matmul %47, %35, %cst_13 {dimension_numbers = #tpu.dot_dimension_numbers<[1], [0], [0], [1], [0, 0, 1, 1], [], []>} : vector<32x32xf32>, vector<32x8xf32>, vector<32x8xf32> -> vector<32x8xf32>
    %49 = vector.extract_strided_slice %48 {offsets = [0, 0], sizes = [8, 8], strides = [1, 1]} : vector<32x8xf32> to vector<8x8xf32>
    %50 = vector.extract_strided_slice %48 {offsets = [8, 0], sizes = [8, 8], strides = [1, 1]} : vector<32x8xf32> to vector<8x8xf32>
    %51 = vector.extract_strided_slice %48 {offsets = [16, 0], sizes = [8, 8], strides = [1, 1]} : vector<32x8xf32> to vector<8x8xf32>
    %52 = vector.extract_strided_slice %48 {offsets = [24, 0], sizes = [8, 8], strides = [1, 1]} : vector<32x8xf32> to vector<8x8xf32>
    %53 = tpu.concatenate %49, %50, %51, %52 in 1 : vector<8x8xf32>, vector<8x8xf32>, vector<8x8xf32>, vector<8x8xf32> -> vector<8x32xf32>
    %c0_14 = arith.constant 0 : index
    %c0_15 = arith.constant 0 : index
    %c0_16 = arith.constant 0 : index
    %54 = vector.load %arg4[%c0_14, %c0_15, %c0_16] : memref<2x32x32xf32, #tpu.memory_space<vmem>>, vector<1x32x32xf32>
    %55 = vector.shape_cast %54 : vector<1x32x32xf32> to vector<32x32xf32>
    %cst_17 = arith.constant dense<0.000000e+00> : vector<8x32xf32>
    %56 = tpu.matmul %53, %55, %cst_17 {dimension_numbers = #tpu.dot_dimension_numbers<[1], [0], [0], [1], [0, 0, 1, 1], [], []>} : vector<8x32xf32>, vector<32x32xf32>, vector<8x32xf32> -> vector<8x32xf32>
    %57 = vector.broadcast %6 : vector<1x32xf32> to vector<8x32xf32>
    %58 = arith.addf %56, %57 : vector<8x32xf32>
    %59 = arith.addf %1, %58 : vector<8x32xf32>
    %cst_18 = arith.constant dense<0.000000e+00> : vector<8xf32>
    %60 = vector.multi_reduction <add>, %59, %cst_18 [1] : vector<8x32xf32> to vector<8xf32>
    %61 = vector.shape_cast %60 : vector<8xf32> to vector<8x1xf32>
    %cst_19 = arith.constant 3.200000e+01 : f32
    %62 = vector.broadcast %cst_19 : f32 to vector<8x1xf32>
    %63 = arith.divf %61, %62 : vector<8x1xf32>
    %64 = vector.broadcast %63 : vector<8x1xf32> to vector<8x32xf32>
    %65 = arith.subf %59, %64 : vector<8x32xf32>
    %66 = arith.mulf %65, %65 : vector<8x32xf32>
    %cst_20 = arith.constant dense<0.000000e+00> : vector<8xf32>
    %67 = vector.multi_reduction <add>, %66, %cst_20 [1] : vector<8x32xf32> to vector<8xf32>
    %68 = vector.shape_cast %67 : vector<8xf32> to vector<8x1xf32>
    %cst_21 = arith.constant 3.200000e+01 : f32
    %69 = vector.broadcast %cst_21 : f32 to vector<8x1xf32>
    %70 = arith.divf %68, %69 : vector<8x1xf32>
    %71 = vector.broadcast %63 : vector<8x1xf32> to vector<8x32xf32>
    %72 = arith.subf %59, %71 : vector<8x32xf32>
    %cst_22 = arith.constant 9.99999974E-6 : f32
    %73 = vector.broadcast %cst_22 : f32 to vector<8x1xf32>
    %74 = arith.addf %70, %73 : vector<8x1xf32>
    %75 = math.rsqrt %74 : vector<8x1xf32>
    %76 = vector.broadcast %75 : vector<8x1xf32> to vector<8x32xf32>
    %77 = arith.mulf %72, %76 : vector<8x32xf32>
    %78 = vector.broadcast %7 : vector<1x32xf32> to vector<8x32xf32>
    %79 = arith.mulf %77, %78 : vector<8x32xf32>
    %80 = vector.broadcast %8 : vector<1x32xf32> to vector<8x32xf32>
    %81 = arith.addf %79, %80 : vector<8x32xf32>
    %c0_23 = arith.constant 0 : index
    %c0_24 = arith.constant 0 : index
    %c0_25 = arith.constant 0 : index
    %82 = vector.load %arg5[%c0_23, %c0_24, %c0_25] : memref<2x32x64xf32, #tpu.memory_space<vmem>>, vector<1x32x64xf32>
    %83 = vector.shape_cast %82 : vector<1x32x64xf32> to vector<32x64xf32>
    %cst_26 = arith.constant dense<0.000000e+00> : vector<8x64xf32>
    %84 = tpu.matmul %81, %83, %cst_26 {dimension_numbers = #tpu.dot_dimension_numbers<[1], [0], [0], [1], [0, 0, 1, 1], [], []>} : vector<8x32xf32>, vector<32x64xf32>, vector<8x64xf32> -> vector<8x64xf32>
    %85 = vector.broadcast %9 : vector<1x64xf32> to vector<8x64xf32>
    %86 = arith.addf %84, %85 : vector<8x64xf32>
    %cst_27 = arith.constant 0.000000e+00 : f32
    %87 = vector.broadcast %cst_27 : f32 to vector<8x64xf32>
    %88 = arith.maximumf %86, %87 : vector<8x64xf32>
    %c0_28 = arith.constant 0 : index
    %c0_29 = arith.constant 0 : index
    %c0_30 = arith.constant 0 : index
    %89 = vector.load %arg6[%c0_28, %c0_29, %c0_30] : memref<2x64x32xf32, #tpu.memory_space<vmem>>, vector<1x64x32xf32>
    %90 = vector.shape_cast %89 : vector<1x64x32xf32> to vector<64x32xf32>
    %cst_31 = arith.constant dense<0.000000e+00> : vector<8x32xf32>
    %91 = tpu.matmul %88, %90, %cst_31 {dimension_numbers = #tpu.dot_dimension_numbers<[1], [0], [0], [1], [0, 0, 1, 1], [], []>} : vector<8x64xf32>, vector<64x32xf32>, vector<8x32xf32> -> vector<8x32xf32>
    %92 = vector.broadcast %10 : vector<1x32xf32> to vector<8x32xf32>
    %93 = arith.addf %91, %92 : vector<8x32xf32>
    %94 = arith.addf %81, %93 : vector<8x32xf32>
    %cst_32 = arith.constant dense<0.000000e+00> : vector<8xf32>
    %95 = vector.multi_reduction <add>, %94, %cst_32 [1] : vector<8x32xf32> to vector<8xf32>
    %96 = vector.shape_cast %95 : vector<8xf32> to vector<8x1xf32>
    %cst_33 = arith.constant 3.200000e+01 : f32
    %97 = vector.broadcast %cst_33 : f32 to vector<8x1xf32>
    %98 = arith.divf %96, %97 : vector<8x1xf32>
    %99 = vector.broadcast %98 : vector<8x1xf32> to vector<8x32xf32>
    %100 = arith.subf %94, %99 : vector<8x32xf32>
    %101 = arith.mulf %100, %100 : vector<8x32xf32>
    %cst_34 = arith.constant dense<0.000000e+00> : vector<8xf32>
    %102 = vector.multi_reduction <add>, %101, %cst_34 [1] : vector<8x32xf32> to vector<8xf32>
    %103 = vector.shape_cast %102 : vector<8xf32> to vector<8x1xf32>
    %cst_35 = arith.constant 3.200000e+01 : f32
    %104 = vector.broadcast %cst_35 : f32 to vector<8x1xf32>
    %105 = arith.divf %103, %104 : vector<8x1xf32>
    %106 = vector.broadcast %98 : vector<8x1xf32> to vector<8x32xf32>
    %107 = arith.subf %94, %106 : vector<8x32xf32>
    %cst_36 = arith.constant 9.99999974E-6 : f32
    %108 = vector.broadcast %cst_36 : f32 to vector<8x1xf32>
    %109 = arith.addf %105, %108 : vector<8x1xf32>
    %110 = math.rsqrt %109 : vector<8x1xf32>
    %111 = vector.broadcast %110 : vector<8x1xf32> to vector<8x32xf32>
    %112 = arith.mulf %107, %111 : vector<8x32xf32>
    %113 = vector.broadcast %11 : vector<1x32xf32> to vector<8x32xf32>
    %114 = arith.mulf %112, %113 : vector<8x32xf32>
    %115 = vector.broadcast %12 : vector<1x32xf32> to vector<8x32xf32>
    %116 = arith.addf %114, %115 : vector<8x32xf32>
    %c1 = arith.constant 1 : index
    %c0_37 = arith.constant 0 : index
    %c0_38 = arith.constant 0 : index
    %117 = vector.load %arg7[%c1, %c0_37, %c0_38] : memref<2x8x128xf32, #tpu.memory_space<vmem>>, vector<1x8x128xf32>
    %118 = vector.shape_cast %117 : vector<1x8x128xf32> to vector<8x128xf32>
    %119 = vector.extract_strided_slice %118 {offsets = [0, 0], sizes = [1, 96], strides = [1, 1]} : vector<8x128xf32> to vector<1x96xf32>
    %120 = vector.extract_strided_slice %118 {offsets = [1, 0], sizes = [1, 32], strides = [1, 1]} : vector<8x128xf32> to vector<1x32xf32>
    %121 = vector.extract_strided_slice %118 {offsets = [2, 0], sizes = [1, 32], strides = [1, 1]} : vector<8x128xf32> to vector<1x32xf32>
    %122 = vector.extract_strided_slice %118 {offsets = [3, 0], sizes = [1, 32], strides = [1, 1]} : vector<8x128xf32> to vector<1x32xf32>
    %123 = vector.extract_strided_slice %118 {offsets = [4, 0], sizes = [1, 64], strides = [1, 1]} : vector<8x128xf32> to vector<1x64xf32>
    %124 = vector.extract_strided_slice %118 {offsets = [5, 0], sizes = [1, 32], strides = [1, 1]} : vector<8x128xf32> to vector<1x32xf32>
    %125 = vector.extract_strided_slice %118 {offsets = [6, 0], sizes = [1, 32], strides = [1, 1]} : vector<8x128xf32> to vector<1x32xf32>
    %126 = vector.extract_strided_slice %118 {offsets = [7, 0], sizes = [1, 32], strides = [1, 1]} : vector<8x128xf32> to vector<1x32xf32>
    %c1_39 = arith.constant 1 : index
    %c0_40 = arith.constant 0 : index
    %c0_41 = arith.constant 0 : index
    %127 = vector.load %arg3[%c1_39, %c0_40, %c0_41] : memref<2x32x96xf32, #tpu.memory_space<vmem>>, vector<1x32x96xf32>
    %128 = vector.shape_cast %127 : vector<1x32x96xf32> to vector<32x96xf32>
    %cst_42 = arith.constant dense<0.000000e+00> : vector<8x96xf32>
    %129 = tpu.matmul %116, %128, %cst_42 {dimension_numbers = #tpu.dot_dimension_numbers<[1], [0], [0], [1], [0, 0, 1, 1], [], []>} : vector<8x32xf32>, vector<32x96xf32>, vector<8x96xf32> -> vector<8x96xf32>
    %130 = vector.broadcast %119 : vector<1x96xf32> to vector<8x96xf32>
    %131 = arith.addf %129, %130 : vector<8x96xf32>
    %132 = vector.extract_strided_slice %131 {offsets = [0, 0], sizes = [8, 32], strides = [1, 1]} : vector<8x96xf32> to vector<8x32xf32>
    %133 = vector.extract_strided_slice %131 {offsets = [0, 32], sizes = [8, 32], strides = [1, 1]} : vector<8x96xf32> to vector<8x32xf32>
    %134 = vector.extract_strided_slice %131 {offsets = [0, 64], sizes = [8, 32], strides = [1, 1]} : vector<8x96xf32> to vector<8x32xf32>
    %135 = vector.extract_strided_slice %132 {offsets = [0, 0], sizes = [8, 8], strides = [1, 1]} : vector<8x32xf32> to vector<8x8xf32>
    %136 = vector.extract_strided_slice %132 {offsets = [0, 8], sizes = [8, 8], strides = [1, 1]} : vector<8x32xf32> to vector<8x8xf32>
    %137 = vector.extract_strided_slice %132 {offsets = [0, 16], sizes = [8, 8], strides = [1, 1]} : vector<8x32xf32> to vector<8x8xf32>
    %138 = vector.extract_strided_slice %132 {offsets = [0, 24], sizes = [8, 8], strides = [1, 1]} : vector<8x32xf32> to vector<8x8xf32>
    %139 = tpu.concatenate %135, %136, %137, %138 in 0 : vector<8x8xf32>, vector<8x8xf32>, vector<8x8xf32>, vector<8x8xf32> -> vector<32x8xf32>
    %140 = vector.extract_strided_slice %133 {offsets = [0, 0], sizes = [8, 8], strides = [1, 1]} : vector<8x32xf32> to vector<8x8xf32>
    %141 = vector.extract_strided_slice %133 {offsets = [0, 8], sizes = [8, 8], strides = [1, 1]} : vector<8x32xf32> to vector<8x8xf32>
    %142 = vector.extract_strided_slice %133 {offsets = [0, 16], sizes = [8, 8], strides = [1, 1]} : vector<8x32xf32> to vector<8x8xf32>
    %143 = vector.extract_strided_slice %133 {offsets = [0, 24], sizes = [8, 8], strides = [1, 1]} : vector<8x32xf32> to vector<8x8xf32>
    %144 = tpu.concatenate %140, %141, %142, %143 in 0 : vector<8x8xf32>, vector<8x8xf32>, vector<8x8xf32>, vector<8x8xf32> -> vector<32x8xf32>
    %145 = vector.extract_strided_slice %134 {offsets = [0, 0], sizes = [8, 8], strides = [1, 1]} : vector<8x32xf32> to vector<8x8xf32>
    %146 = vector.extract_strided_slice %134 {offsets = [0, 8], sizes = [8, 8], strides = [1, 1]} : vector<8x32xf32> to vector<8x8xf32>
    %147 = vector.extract_strided_slice %134 {offsets = [0, 16], sizes = [8, 8], strides = [1, 1]} : vector<8x32xf32> to vector<8x8xf32>
    %148 = vector.extract_strided_slice %134 {offsets = [0, 24], sizes = [8, 8], strides = [1, 1]} : vector<8x32xf32> to vector<8x8xf32>
    %149 = tpu.concatenate %145, %146, %147, %148 in 0 : vector<8x8xf32>, vector<8x8xf32>, vector<8x8xf32>, vector<8x8xf32> -> vector<32x8xf32>
    %cst_43 = arith.constant dense<0.000000e+00> : vector<32x32xf32>
    %150 = tpu.matmul %139, %144, %cst_43 {dimension_numbers = #tpu.dot_dimension_numbers<[1], [1], [0], [0], [0, 0, 1, 0], [], []>} : vector<32x8xf32>, vector<32x8xf32>, vector<32x32xf32> -> vector<32x32xf32>
    %151 = arith.addf %150, %2 : vector<32x32xf32>
    %cst_44 = arith.constant dense<0xFF800000> : vector<32xf32>
    %152 = vector.multi_reduction <maximumf>, %151, %cst_44 [1] : vector<32x32xf32> to vector<32xf32>
    %153 = vector.shape_cast %152 : vector<32xf32> to vector<32x1xf32>
    %154 = vector.broadcast %153 : vector<32x1xf32> to vector<32x32xf32>
    %155 = arith.subf %151, %154 : vector<32x32xf32>
    %156 = math.exp %155 : vector<32x32xf32>
    %cst_45 = arith.constant dense<0.000000e+00> : vector<32xf32>
    %157 = vector.multi_reduction <add>, %156, %cst_45 [1] : vector<32x32xf32> to vector<32xf32>
    %158 = vector.shape_cast %157 : vector<32xf32> to vector<32x1xf32>
    %159 = tpu.reciprocal %158 {approx = true} : vector<32x1xf32> -> vector<32x1xf32>
    %160 = vector.broadcast %159 : vector<32x1xf32> to vector<32x32xf32>
    %161 = arith.mulf %156, %160 : vector<32x32xf32>
    %cst_46 = arith.constant dense<0.000000e+00> : vector<32x8xf32>
    %162 = tpu.matmul %161, %149, %cst_46 {dimension_numbers = #tpu.dot_dimension_numbers<[1], [0], [0], [1], [0, 0, 1, 1], [], []>} : vector<32x32xf32>, vector<32x8xf32>, vector<32x8xf32> -> vector<32x8xf32>
    %163 = vector.extract_strided_slice %162 {offsets = [0, 0], sizes = [8, 8], strides = [1, 1]} : vector<32x8xf32> to vector<8x8xf32>
    %164 = vector.extract_strided_slice %162 {offsets = [8, 0], sizes = [8, 8], strides = [1, 1]} : vector<32x8xf32> to vector<8x8xf32>
    %165 = vector.extract_strided_slice %162 {offsets = [16, 0], sizes = [8, 8], strides = [1, 1]} : vector<32x8xf32> to vector<8x8xf32>
    %166 = vector.extract_strided_slice %162 {offsets = [24, 0], sizes = [8, 8], strides = [1, 1]} : vector<32x8xf32> to vector<8x8xf32>
    %167 = tpu.concatenate %163, %164, %165, %166 in 1 : vector<8x8xf32>, vector<8x8xf32>, vector<8x8xf32>, vector<8x8xf32> -> vector<8x32xf32>
    %c1_47 = arith.constant 1 : index
    %c0_48 = arith.constant 0 : index
    %c0_49 = arith.constant 0 : index
    %168 = vector.load %arg4[%c1_47, %c0_48, %c0_49] : memref<2x32x32xf32, #tpu.memory_space<vmem>>, vector<1x32x32xf32>
    %169 = vector.shape_cast %168 : vector<1x32x32xf32> to vector<32x32xf32>
    %cst_50 = arith.constant dense<0.000000e+00> : vector<8x32xf32>
    %170 = tpu.matmul %167, %169, %cst_50 {dimension_numbers = #tpu.dot_dimension_numbers<[1], [0], [0], [1], [0, 0, 1, 1], [], []>} : vector<8x32xf32>, vector<32x32xf32>, vector<8x32xf32> -> vector<8x32xf32>
    %171 = vector.broadcast %120 : vector<1x32xf32> to vector<8x32xf32>
    %172 = arith.addf %170, %171 : vector<8x32xf32>
    %173 = arith.addf %116, %172 : vector<8x32xf32>
    %cst_51 = arith.constant dense<0.000000e+00> : vector<8xf32>
    %174 = vector.multi_reduction <add>, %173, %cst_51 [1] : vector<8x32xf32> to vector<8xf32>
    %175 = vector.shape_cast %174 : vector<8xf32> to vector<8x1xf32>
    %cst_52 = arith.constant 3.200000e+01 : f32
    %176 = vector.broadcast %cst_52 : f32 to vector<8x1xf32>
    %177 = arith.divf %175, %176 : vector<8x1xf32>
    %178 = vector.broadcast %177 : vector<8x1xf32> to vector<8x32xf32>
    %179 = arith.subf %173, %178 : vector<8x32xf32>
    %180 = arith.mulf %179, %179 : vector<8x32xf32>
    %cst_53 = arith.constant dense<0.000000e+00> : vector<8xf32>
    %181 = vector.multi_reduction <add>, %180, %cst_53 [1] : vector<8x32xf32> to vector<8xf32>
    %182 = vector.shape_cast %181 : vector<8xf32> to vector<8x1xf32>
    %cst_54 = arith.constant 3.200000e+01 : f32
    %183 = vector.broadcast %cst_54 : f32 to vector<8x1xf32>
    %184 = arith.divf %182, %183 : vector<8x1xf32>
    %185 = vector.broadcast %177 : vector<8x1xf32> to vector<8x32xf32>
    %186 = arith.subf %173, %185 : vector<8x32xf32>
    %cst_55 = arith.constant 9.99999974E-6 : f32
    %187 = vector.broadcast %cst_55 : f32 to vector<8x1xf32>
    %188 = arith.addf %184, %187 : vector<8x1xf32>
    %189 = math.rsqrt %188 : vector<8x1xf32>
    %190 = vector.broadcast %189 : vector<8x1xf32> to vector<8x32xf32>
    %191 = arith.mulf %186, %190 : vector<8x32xf32>
    %192 = vector.broadcast %121 : vector<1x32xf32> to vector<8x32xf32>
    %193 = arith.mulf %191, %192 : vector<8x32xf32>
    %194 = vector.broadcast %122 : vector<1x32xf32> to vector<8x32xf32>
    %195 = arith.addf %193, %194 : vector<8x32xf32>
    %c1_56 = arith.constant 1 : index
    %c0_57 = arith.constant 0 : index
    %c0_58 = arith.constant 0 : index
    %196 = vector.load %arg5[%c1_56, %c0_57, %c0_58] : memref<2x32x64xf32, #tpu.memory_space<vmem>>, vector<1x32x64xf32>
    %197 = vector.shape_cast %196 : vector<1x32x64xf32> to vector<32x64xf32>
    %cst_59 = arith.constant dense<0.000000e+00> : vector<8x64xf32>
    %198 = tpu.matmul %195, %197, %cst_59 {dimension_numbers = #tpu.dot_dimension_numbers<[1], [0], [0], [1], [0, 0, 1, 1], [], []>} : vector<8x32xf32>, vector<32x64xf32>, vector<8x64xf32> -> vector<8x64xf32>
    %199 = vector.broadcast %123 : vector<1x64xf32> to vector<8x64xf32>
    %200 = arith.addf %198, %199 : vector<8x64xf32>
    %cst_60 = arith.constant 0.000000e+00 : f32
    %201 = vector.broadcast %cst_60 : f32 to vector<8x64xf32>
    %202 = arith.maximumf %200, %201 : vector<8x64xf32>
    %c1_61 = arith.constant 1 : index
    %c0_62 = arith.constant 0 : index
    %c0_63 = arith.constant 0 : index
    %203 = vector.load %arg6[%c1_61, %c0_62, %c0_63] : memref<2x64x32xf32, #tpu.memory_space<vmem>>, vector<1x64x32xf32>
    %204 = vector.shape_cast %203 : vector<1x64x32xf32> to vector<64x32xf32>
    %cst_64 = arith.constant dense<0.000000e+00> : vector<8x32xf32>
    %205 = tpu.matmul %202, %204, %cst_64 {dimension_numbers = #tpu.dot_dimension_numbers<[1], [0], [0], [1], [0, 0, 1, 1], [], []>} : vector<8x64xf32>, vector<64x32xf32>, vector<8x32xf32> -> vector<8x32xf32>
    %206 = vector.broadcast %124 : vector<1x32xf32> to vector<8x32xf32>
    %207 = arith.addf %205, %206 : vector<8x32xf32>
    %208 = arith.addf %195, %207 : vector<8x32xf32>
    %cst_65 = arith.constant dense<0.000000e+00> : vector<8xf32>
    %209 = vector.multi_reduction <add>, %208, %cst_65 [1] : vector<8x32xf32> to vector<8xf32>
    %210 = vector.shape_cast %209 : vector<8xf32> to vector<8x1xf32>
    %cst_66 = arith.constant 3.200000e+01 : f32
    %211 = vector.broadcast %cst_66 : f32 to vector<8x1xf32>
    %212 = arith.divf %210, %211 : vector<8x1xf32>
    %213 = vector.broadcast %212 : vector<8x1xf32> to vector<8x32xf32>
    %214 = arith.subf %208, %213 : vector<8x32xf32>
    %215 = arith.mulf %214, %214 : vector<8x32xf32>
    %cst_67 = arith.constant dense<0.000000e+00> : vector<8xf32>
    %216 = vector.multi_reduction <add>, %215, %cst_67 [1] : vector<8x32xf32> to vector<8xf32>
    %217 = vector.shape_cast %216 : vector<8xf32> to vector<8x1xf32>
    %cst_68 = arith.constant 3.200000e+01 : f32
    %218 = vector.broadcast %cst_68 : f32 to vector<8x1xf32>
    %219 = arith.divf %217, %218 : vector<8x1xf32>
    %220 = vector.broadcast %212 : vector<8x1xf32> to vector<8x32xf32>
    %221 = arith.subf %208, %220 : vector<8x32xf32>
    %cst_69 = arith.constant 9.99999974E-6 : f32
    %222 = vector.broadcast %cst_69 : f32 to vector<8x1xf32>
    %223 = arith.addf %219, %222 : vector<8x1xf32>
    %224 = math.rsqrt %223 : vector<8x1xf32>
    %225 = vector.broadcast %224 : vector<8x1xf32> to vector<8x32xf32>
    %226 = arith.mulf %221, %225 : vector<8x32xf32>
    %227 = vector.broadcast %125 : vector<1x32xf32> to vector<8x32xf32>
    %228 = arith.mulf %226, %227 : vector<8x32xf32>
    %229 = vector.broadcast %126 : vector<1x32xf32> to vector<8x32xf32>
    %230 = arith.addf %228, %229 : vector<8x32xf32>
    %c0_70 = arith.constant 0 : index
    %c0_71 = arith.constant 0 : index
    %231 = vector.load %arg8[%c0_70, %c0_71] : memref<32x128xf32, #tpu.memory_space<vmem>>, vector<32x128xf32>
    %cst_72 = arith.constant dense<0.000000e+00> : vector<8x128xf32>
    %232 = tpu.matmul %230, %231, %cst_72 {dimension_numbers = #tpu.dot_dimension_numbers<[1], [0], [0], [1], [0, 0, 1, 1], [], []>} : vector<8x32xf32>, vector<32x128xf32>, vector<8x128xf32> -> vector<8x128xf32>
    %cst_73 = arith.constant dense<0xFF800000> : vector<8xf32>
    %233 = vector.multi_reduction <maximumf>, %232, %cst_73 [1] : vector<8x128xf32> to vector<8xf32>
    %234 = vector.shape_cast %233 : vector<8xf32> to vector<8x1xf32>
    %235 = vector.broadcast %234 : vector<8x1xf32> to vector<8x128xf32>
    %236 = arith.subf %232, %235 : vector<8x128xf32>
    %237 = math.exp %236 : vector<8x128xf32>
    %cst_74 = arith.constant dense<0.000000e+00> : vector<8xf32>
    %238 = vector.multi_reduction <add>, %237, %cst_74 [1] : vector<8x128xf32> to vector<8xf32>
    %239 = vector.shape_cast %238 : vector<8xf32> to vector<8x1xf32>
    %240 = math.log %239 : vector<8x1xf32>
    %241 = vector.broadcast %240 : vector<8x1xf32> to vector<8x128xf32>
    %242 = arith.subf %236, %241 : vector<8x128xf32>
    %c0_75 = arith.constant 0 : index
    %c0_76 = arith.constant 0 : index
    %c0_77 = arith.constant 0 : index
    %243 = vector.load %arg9[%c0_75, %c0_76, %c0_77] : memref<1x8x128xf32, #tpu.memory_space<vmem>>, vector<1x8x128xf32>
    %244 = vector.shape_cast %243 : vector<1x8x128xf32> to vector<8x128xf32>
    %245 = vector.shape_cast %242 : vector<8x128xf32> to vector<1x8x128xf32>
    tpu.vector_store %arg9[%c0_75, %c0_76, %c0_77], %245 {strides = array<i32>} : memref<1x8x128xf32, #tpu.memory_space<vmem>>, vector<1x8x128xf32>,
    return
  }
  func.func @transform_0(%arg0: i32) -> (i32, i32, i32) {
    %c0_i32 = arith.constant 0 : i32
    %c0_i32_0 = arith.constant 0 : i32
    %c0_i32_1 = arith.constant 0 : i32
    return %arg0, %c0_i32, %c0_i32_0 : i32, i32, i32
  }
  func.func @transform_1(%arg0: i32) -> (i32, i32) {
    %c0_i32 = arith.constant 0 : i32
    %c0_i32_0 = arith.constant 0 : i32
    %c0_i32_1 = arith.constant 0 : i32
    return %c0_i32, %c0_i32_0 : i32, i32
  }
  func.func @transform_2(%arg0: i32) -> (i32, i32, i32) {
    %c0_i32 = arith.constant 0 : i32
    %c0_i32_0 = arith.constant 0 : i32
    %c0_i32_1 = arith.constant 0 : i32
    %c0_i32_2 = arith.constant 0 : i32
    return %c0_i32, %c0_i32_0, %c0_i32_1 : i32, i32, i32
  }
  func.func @transform_3(%arg0: i32) -> (i32, i32, i32) {
    %c0_i32 = arith.constant 0 : i32
    %c0_i32_0 = arith.constant 0 : i32
    %c0_i32_1 = arith.constant 0 : i32
    %c0_i32_2 = arith.constant 0 : i32
    return %c0_i32, %c0_i32_0, %c0_i32_1 : i32, i32, i32
  }
  func.func @transform_4(%arg0: i32) -> (i32, i32, i32) {
    %c0_i32 = arith.constant 0 : i32
    %c0_i32_0 = arith.constant 0 : i32
    %c0_i32_1 = arith.constant 0 : i32
    %c0_i32_2 = arith.constant 0 : i32
    return %c0_i32, %c0_i32_0, %c0_i32_1 : i32, i32, i32
  }
  func.func @transform_5(%arg0: i32) -> (i32, i32, i32) {
    %c0_i32 = arith.constant 0 : i32
    %c0_i32_0 = arith.constant 0 : i32
    %c0_i32_1 = arith.constant 0 : i32
    %c0_i32_2 = arith.constant 0 : i32
    return %c0_i32, %c0_i32_0, %c0_i32_1 : i32, i32, i32
  }
  func.func @transform_6(%arg0: i32) -> (i32, i32, i32) {
    %c0_i32 = arith.constant 0 : i32
    %c0_i32_0 = arith.constant 0 : i32
    %c0_i32_1 = arith.constant 0 : i32
    %c0_i32_2 = arith.constant 0 : i32
    return %c0_i32, %c0_i32_0, %c0_i32_1 : i32, i32, i32
  }
  func.func @transform_7(%arg0: i32) -> (i32, i32) {
    %c0_i32 = arith.constant 0 : i32
    %c0_i32_0 = arith.constant 0 : i32
    %c0_i32_1 = arith.constant 0 : i32
    return %c0_i32, %c0_i32_0 : i32, i32
  }
  func.func @transform_8(%arg0: i32) -> (i32, i32, i32) {
    %c0_i32 = arith.constant 0 : i32
    %c0_i32_0 = arith.constant 0 : i32
    %c0_i32_1 = arith.constant 0 : i32
    return %arg0, %c0_i32, %c0_i32_0 : i32, i32, i32
  }
}

</mosaic_0001>

<bundles_post_ra>
// kernel: tpu_custom_call.1
= control target key start
LH: loop header
LB: loop body
LE: loop exit
PB: predicated region body
PF: predicated region fallthrough
CT: control target
= control target key end

     0   :  { %13 = vsyncpa [#allocation3], 0  ;;  %s3291_s0 = inlined_call_operand.hbm [shape: f32[2,8,32], index: 0, kind: input, shape index: {}]   ;;  %s3292_s1 = inlined_call_operand.hbm [shape: f32[32,32], index: 1, kind: input, shape index: {}]   ;;  %s3293_s2 = inlined_call_operand.vmem [shape: f32[2,32,96], index: 2, kind: input, shape index: {}]   ;;  %s3294_s3 = inlined_call_operand.vmem [shape: f32[2,32,32], index: 3, kind: input, shape index: {}]   ;;  %s3295_s4 = inlined_call_operand.vmem [shape: f32[2,32,64], index: 4, kind: input, shape index: {}]   ;;  %s3296_s5 = inlined_call_operand.vmem [shape: f32[2,64,32], index: 5, kind: input, shape index: {}]   ;;  %s3297_s6 = inlined_call_operand.vmem [shape: f32[2,8,128], index: 6, kind: input, shape index: {}]   ;;  %s3298_s7 = inlined_call_operand.hbm [shape: f32[32,128], index: 7, kind: input, shape index: {}]   ;;  %s3299_s8 = inlined_call_operand.hbm [shape: f32[2,8,128], index: 8, kind: output, shape index: {}]  }
   0x1   :  { %15 = vsyncpa [#allocation3 + $0x1], 0 }
   0x2   :  { %16 = vsyncpa [#allocation6], 0 }
   0x3   :  { %17 = vsyncpa [#allocation4], 0 }
   0x4   :  { %19 = vsyncpa [#allocation4 + $0x1], 0  ;;  %s2697_s27 = smov 0   ;;  %s2699_s28 = smov 0  }
   0x5   :  { %s2701_s29 = smov 0   ;;  %s2703_s30 = smov 0  }
   0x6 LB: > { %s2718_s9 = sadd.s32 4294967295, %s2633_s30   ;;  %s1881_s10 = sadd.s32 4294967294, %s2633_s30   ;;  %s2633_s30 = sphi %s2703_s30, %s3337_s30   ;;  %s2629_s29 = sphi %s2701_s29, %s3336_s29   ;;  %s2625_s28 = sphi %s2699_s28, %s3335_s28   ;;  %s2621_s27 = sphi %s2697_s27, %s3334_s27  }
   0x7   : > { %p45_p0 = scmp.ne.s32.totalorder %s2625_s28, %s2621_s27  ;;  %p3300_p1 = scmp.eq.s32.totalorder %s2718_s9, 0 }
   0x8   : > { %p222_p3 = scmp.eq.s32.totalorder %s1881_s10, 1  ;;  %p1882_p5 = scmp.ge.s32.totalorder %s2633_s30, 1 }
   0x9   : > { %p2727_p4 = por %p3300_p1, %p45_p0  ;;  %p229_p7 = scmp.lt.s32.totalorder %s2633_s30, 3 }
   0xa   : > { %p2732_p6 = por %p222_p3, %p45_p0  ;;  %s2635_s14 = smov [#allocation5]  }
   0xb   : > { %s3312_s11 = scalar_select %p2727_p4, 1, 0 }
   0xc   : > { %s3313_s12 = scalar_select %p2732_p6, 1, 0 }
   0xd   : > { %p2737_p8 = pnand %p1882_p5, %p229_p7  ;;  %s241_s15 = sshll.u32 %s2635_s14, 4  ;;  %s2741_s15 = int_to_ptr.vmem [resolvable:$true] %s241_s15 }
   0xe   : > { %s2636_s17 = smov [#allocation7]   ;;  %s2477_s21 = scalar_lea.hbm %s3292_s1, 512 }
   0xf   : > { %p2325_p9 = pneg %p2737_p8  ;;  %s269_s18 = sshll.u32 %s2636_s17, 4  ;;  %s2752_s18 = int_to_ptr.vmem [resolvable:$true] %s269_s18 }
  0x10   : > { %p2478_p12 = scmp.ne.s32.totalorder %s3292_s1, %s2477_s21  ;;  %p2484_p5 = scmp.lt.u32.totalorder %s2477_s21, %s3292_s1 }
  0x11   : > { %p2748_p11 = pnand %p2325_p9, %p3300_p1 }
  0x13   : > { %p2479_p13 = pneg %p2748_p11 }
  0x15   : > { %p2480_p0 = pnand %p2479_p13, %p2478_p12 }
  0x17   : > { %p2481_p3 = pneg %p2480_p0 }
  0x19   : > { %p2486_p7 = pnand %p2484_p5, %p2481_p3 }
  0x1b   : > { %2489 = shalt.err (!%p2486_p7)
}
  0x1c   : > { %s2490_s26 = scalar_lea.vmem %s2741_s15, 512  ;;  %p2498_p2 = scmp.lt.s32.totalorder %s2741_s15, %s2741_s15 }
  0x1d   : > { %p2491_p9 = scmp.ne.s32.totalorder %s2741_s15, %s2490_s26  ;;  %p2499_p12 = scmp.lt.s32.totalorder %s2490_s26, %s2490_s26 }
  0x1f   : > { %p2493_p10 = pnand %p2491_p9, %p2479_p13  ;;  %p2500_p0 = por %p2499_p12, %p2498_p2 }
  0x21   : > { %p2494_p1 = pneg %p2493_p10 }
  0x23   : > { %p2501_p6 = pnand %p2500_p0, %p2494_p1 }
  0x25   : > { %2504 = shalt.err (!%p2501_p6)
}
  0x26   : > { %s2637_s10 = smov 128   ;;  %s2638_s14 = smov 8  }
  0x27   : > { %2328 = dma.hbm_to_vmem [thread:$0]  (!%p2748_p11), %s3292_s1, 512, %s2741_s15, [#allocation6], %s2637_s10, %s2637_s10, %s2638_s14  }
  0x28   : > { %s2505_s22 = scalar_lea.hbm %s3298_s7, 512 }
  0x29   : > { %p2506_p2 = scmp.ne.s32.totalorder %s3298_s7, %s2505_s22  ;;  %p2512_p10 = scmp.lt.u32.totalorder %s2505_s22, %s3298_s7 }
  0x2b   : > { %p2508_p1 = pnand %p2506_p2, %p2479_p13 }
  0x2d   : > { %p2509_p6 = pneg %p2508_p1 }
  0x2f   : > { %p2514_p3 = pnand %p2512_p10, %p2509_p6 }
  0x31   : > { %2517 = shalt.err (!%p2514_p3)
}
  0x32   : > { %s2518_s15 = scalar_lea.vmem %s2752_s18, 512  ;;  %p2526_p12 = scmp.lt.s32.totalorder %s2752_s18, %s2752_s18 }
  0x33   : > { %p2519_p5 = scmp.ne.s32.totalorder %s2752_s18, %s2518_s15  ;;  %p2527_p0 = scmp.lt.s32.totalorder %s2518_s15, %s2518_s15 }
  0x35   : > { %p2521_p7 = pnand %p2519_p5, %p2479_p13  ;;  %p2528_p2 = por %p2527_p0, %p2526_p12 }
  0x37   : > { %p2522_p9 = pneg %p2521_p7 }
  0x39   : > { %p2529_p1 = pnand %p2528_p2, %p2522_p9 }
  0x3b   : > { %2532 = shalt.err (!%p2529_p1)
}
  0x3c   : > { %2331 = dma.hbm_to_vmem [thread:$0]  (!%p2748_p11), %s3298_s7, 512, %s2752_s18, [#allocation6], %s2637_s10, %s2637_s10, %s2638_s14  }
  0x3d   : > { %s2807_s20 = sadd.s32 1, %s2633_s30   ;;  %s32_s16 = sadd.s32 1, %s2629_s29 }
  0x3e   : > { %s29_s21 = ssub.s32 %s2633_s30, %s2807_s20  ;;  %p39_p13 = scmp.ne.s32.totalorder %s2629_s29, %s2625_s28 }
  0x3f   : > { %p30_p6 = scmp.eq.s32.totalorder %s29_s21, 0  ;;  %p40_p10 = scmp.eq.s32.totalorder %s2633_s30, 0 }
  0x40   : > { %p3316_p3 = scmp.eq.s32.totalorder %s2718_s9, 1  ;;  %p2342_p7 = scmp.lt.s32.totalorder %s2633_s30, 2 }
  0x41   : > { %s2823_s23 = scalar_select %p30_p6, %s2629_s29, %s32_s16  }
  0x42   : > { %p2817_p5 = por %p3316_p3, %p39_p13  ;;  %p41_p9 = por %p40_p10, %p39_p13 }
  0x43   : > { %s283_s24 = sand.u32 1, %s2629_s29   ;;  %s1887_s18 = sshll.u32 %s2633_s30, 7 }
  0x44   : > { %s3317_s22 = scalar_select %p2817_p5, 1, 0 }
  0x45   : > { %s1886_s25 = sshll.u32 %s283_s24, 3  ;;  %s2830_s26 = scalar_lea.hbm %s3291_s0, %s1887_s18 }
  0x46   : > { %s287_s15 = scalar_lea.vmem [#allocation2], %s1886_s25  ;;  %p2834_p11 = pnand %p2342_p7, %p41_p9 }
  0x47   : > { %s294_s17 = sshll.u32 %s287_s15, 4  ;;  %s284_s16 = scalar_lea.sflag [#allocation3], %s283_s24  ;;  %s2832_s17 = int_to_ptr.vmem [resolvable:$true] %s294_s17 }
  0x48   : > { %s2533_s21 = scalar_lea.hbm %s2830_s26, 128  ;;  %p2535_p0 = pneg %p2834_p11 }
  0x49   : > { %p2534_p12 = scmp.ne.s32.totalorder %s2830_s26, %s2533_s21  ;;  %s2538_s10 = scalar_lea.hbm %s3291_s0, 256 }
  0x4a   : > { %p2539_p13 = scmp.lt.u32.totalorder %s2830_s26, %s3291_s0  ;;  %p2540_p6 = scmp.lt.u32.totalorder %s2538_s10, %s2533_s21 }
  0x4b   : > { %p2536_p2 = pnand %p2535_p0, %p2534_p12  ;;  %p2542_p3 = scmp.lt.u32.totalorder %s2533_s21, %s2830_s26 }
  0x4c   : > { %p2541_p10 = por %p2540_p6, %p2539_p13 }
  0x4d   : > { %p2537_p1 = pneg %p2536_p2 }
  0x4e   : > { %p2543_p7 = por %p2542_p3, %p2541_p10 }
  0x50   : > { %p2544_p9 = pnand %p2543_p7, %p2537_p1 }
  0x52   : > { %2547 = shalt.err (!%p2544_p9)
}
  0x53   : > { %s2548_s24 = scalar_lea.vmem %s2832_s17, 128  ;;  %s2639_s18 = smov [#allocation2]  }
  0x54   : > { %p2549_p12 = scmp.ne.s32.totalorder %s2832_s17, %s2548_s24  ;;  %s2553_s25 = sshll.u32 %s2639_s18, 4  ;;  %s2554_s25 = int_to_ptr.vmem [resolvable:$false] %s2553_s25 }
  0x55   : > { %s2555_s14 = scalar_lea.vmem %s2554_s25, 256  ;;  %p2556_p4 = scmp.lt.s32.totalorder %s2832_s17, %s2554_s25 }
  0x56   : > { %p2551_p2 = pnand %p2549_p12, %p2535_p0  ;;  %p2557_p13 = scmp.lt.s32.totalorder %s2555_s14, %s2548_s24 }
  0x58   : > { %p2552_p5 = pneg %p2551_p2  ;;  %p2558_p6 = por %p2557_p13, %p2556_p4 }
  0x5a   : > { %p2559_p10 = pnand %p2558_p6, %p2552_p5 }
  0x5c   : > { %2562 = shalt.err (!%p2559_p10)
}
  0x5d   : > { %2335 = dma.hbm_to_vmem [thread:$0]  (!%p2834_p11), %s2830_s26, 128, %s2832_s17, %s284_s16  }
  0x5e   : > { %303 = sbr.rel (%p2737_p8) target bundleno = 5875 (0x16f3), region = 52  ;;  %s2866_s21 = sand.u32 (!%p2737_p8), 1, %s2625_s28  }
  0x5f   : > { %s3303_s10 = sshll.u32 (!%p2737_p8), %s2866_s21, 3  ;;  %s306_s15 = scalar_lea.sflag (!%p2737_p8), [#allocation3], %s2866_s21 }
  0x60   : > { %s309_s24 = scalar_lea.vmem (!%p2737_p8), [#allocation2], %s3303_s10  ;;  %p3319_p4 = scmp.ne.s32.totalorder (!%p2737_p8), %s3312_s11, 0 }
  0x65   : > { %2608 = dma.done.wait (%p3319_p4), %s306_s15, 128  }
  0x66   : > { %2610 = vsyncadd (%p3319_p4), %s306_s15, 4294967168  ;;  %p3320_p5 = scmp.eq.s32.totalorder %s2718_s9, 0 }
  0x68   : > { %2612 = dma.done.wait (%p3320_p5), [#allocation6], 1024   ;;  %p3321_p8 = pmov %p3320_p5 }
  0x69   : > { %v2640_v0 = vmov 0.0|0.0   ;;  %vm2641_vm0 = vmmov 0   ;;  %v2642_v1 = vmov 0.0   ;;  %v356_v2 = vld [vmem:[%s3293_s2] sm:$0xff]  ;;  %v357_v3 = vld [vmem:[%s3293_s2 + $0x8] sm:$0xff]  ;;  %v358_v4 = vld [vmem:[%s3293_s2 + $0x10] sm:$0xff]  ;;  %v360_v9 = vlaneseq }
  0x6a   : > { %2614 = vsyncadd (%p3321_p8), [#allocation6], 4294966272  ;;  %2207 = vmatprep.subr.bf16.mxu0 %v2640_v0  ;;  %2044 = vmatprep.mubr.msk.f32.mxu0 %vm2641_vm0, %v2642_v1  ;;  %v2208_v5 = vpack.c.bf16 %v357_v3, %v356_v2  ;;  %v359_v6 = vld [vmem:[%s3293_s2 + $0x18] sm:$0xff]  ;;  %v2896_v8 = vld [vmem:[%s309_s24] sm:$0xff]  ;;  %vm364_vm1 = vcmask 261120   ;;  %vm453_vm2 = vcmask 64512  }
  0x6b   : > { %v2211_v7 = vpack.c.bf16 %v359_v6, %v358_v4  ;;  %v2900_v10 = vshrl.u32 %v360_v9, 7  ;;  %v2906_v12 = vld [vmem:[%s3297_s6] sm:$0xff]  ;;  %s3311_s24 = smov 104   ;;  %s2644_s13 = smov 120   ;;  %vm2925_vm3 = vmpackc.low %vm453_vm2, %vm453_vm2  ;;  %v2943_v31 = vld [vmem:[#allocation5 + $0x8] sm:$0xff]  ;;  %vm721_vm4 = vcmask 130048  }
  0x6c   : > { %2209 = vmatpush3.bf16.msra.mxu0 %v2208_v5  ;;  %s2645_s26 = smov 112   ;;  %s3309_s11 = smov 96   ;;  %v2945_v32 = vld [vmem:[#allocation5] sm:$0xff]  ;;  %v2949_v37 = vld [vmem:[#allocation5 + $0x18] sm:$0xff]  ;;  %v2952_v39 = vld [vmem:[#allocation5 + $0x10] sm:$0xff]  ;;  %vm723_vm5 = vcmask 195584  }
  0x6d   : > { %2210 = vmatprep.subr.bf16.mxu0 %v2640_v0  ;;  %v362_v11 = vsub.s32 0, %v2900_v10  ;;  %s3304_s17 = smov 64   ;;  %s3308_s19 = smov 8   ;;  %vm925_vm6 = vcmask 523264  }
  0x6e   : > { %s3307_s16 = smov 24   ;;  %s3306_s18 = smov 16  }
  0x6f   : > { %v363_v13 = vrot.slane %v2906_v12, %v362_v11  ;;  %s3327_s14 = smov 8   ;;  %p3331_p0 = scmp.ne.s32.totalorder %s3317_s22, 0 }
  0x70   : > { %2212 = vmatpush3.bf16.msra.mxu0 %v2211_v7 }
  0x73   : > { %2045 = vmatmul.mubr.msk.f32.vlgmr.msra.gmra.mrb[0].mxu0 %vm364_vm1, %v2896_v8 }
 0x146   : > { %v434_v14 = vpop.f32.mrb[0].mxu0 }
 0x147   : > { %v435_v15 = vadd.f32 %v434_v14, %v363_v13  ;;  %v2046_v16 = vpop.f32.mrb[1].mxu0 }
 0x149   : > { %443 = vrot.lane.b32.xlu1 %v435_v15, %s3311_s24  ;;  %439 = vrot.lane.b32.xlu0 %v435_v15, %s2644_s13 }
 0x14a   : > { %2055 = vmatprep.mubr.msk.f32.mxu1 %vm453_vm2, %v435_v15 }
 0x14d   : > { %441 = vrot.lane.b32.xlu0 %v435_v15, %s2645_s26 }
 0x1bb   : > { %v440_v17 = vpop.permute.xlu0 %439  ;;  %v444_v19 = vpop.permute.xlu1 %443 }
 0x1bc   : > { %v2915_v18 = vpack.i.bf16 %v440_v17, %v435_v15 }
 0x1be   : > { %2394 = vrot.lane.b32.xlu1 %v2915_v18, %s3309_s11 }
 0x1bf   : > { %v442_v20 = vpop.permute.xlu0 %441 }
 0x1c0   : > { %v2919_v21 = vpack.i.bf16 %v444_v19, %v442_v20 }
 0x1c2   : > { %2399 = vrot.lane.b32.xlu0 %v2919_v21, %s3309_s11  ;;  %s1779_s11 = scalar_lea.sflag [#allocation4], %s2866_s21 }
 0x230   : > { %v2395_v22 = vpop.permute.xlu1 %2394 }
 0x231   : > { %v2397_v23 = vunpack.i.h.bf16 %v2395_v22  ;;  %v2396_v24 = vunpack.i.l.bf16 %v2395_v22 }
 0x233   : > { %v2213_v26 = vpack.c.bf16 %v2397_v23, %v2396_v24 }
 0x234   : > { %v2400_v27 = vpop.permute.xlu0 %2399 }
 0x235   : > { %v2402_v28 = vunpack.i.h.bf16 %v2400_v27  ;;  %v2401_v29 = vunpack.i.l.bf16 %v2400_v27  ;;  %2215 = vmatprep.subr.msk.bf16.mxu1 %vm2925_vm3, %v2213_v26 }
 0x236   : > { %2218 = vmatpush3.bf16.xpose.msk.msra.mxu1 %vm2925_vm3, %v2213_v26 }
 0x237   : > { %v2219_v30 = vpack.c.bf16 %v2402_v28, %v2401_v29 }
 0x239   : > { %2221 = vmatprep.subr.msk.bf16.mxu1 %vm2925_vm3, %v2219_v30 }
 0x23e   : > { %2224 = vmatpush3.bf16.xpose.msk.msra.mxu1 %vm2925_vm3, %v2219_v30  ;;  %v725_v30 = vld [vmem:[%s3294_s3] sm:$0xff] }
 0x23f   : > { %2239 = vmatprep.subr.bf16.mxu1 %v2640_v0 }
 0x245   : > { %2056 = vmatmul.mubr.msk.f32.vlgmr.msra.gmra.mrb[0].mxu1 %vm453_vm2, %v440_v17 }
 0x246   : > { %2058 = vmatprep.mubr.msk.f32.mxu1 %vm453_vm2, %v442_v20 }
 0x249   : > { %2059 = vmatmul.mubr.msk.f32.gmra.mrb[2].mxu1 %vm453_vm2, %v444_v19 }
 0x24a   : > { %2094 = vmatprep.mubr.msk.f32.mxu1 %vm2641_vm0, %v2642_v1 }
 0x318   : > { %v2057_v33 = vpop.f32.mrb[0].mxu1 }
 0x319   : > { %v542_v34 = vadd.f32 %v2057_v33, %v2943_v31  ;;  %v536_v35 = vpop.f32.mrb[1].mxu1  ;;  %v726_v33 = vld [vmem:[%s3294_s3 + $0x8] sm:$0xff] }
 0x31a   : > { %v537_v36 = vadd.f32 %v536_v35, %v2945_v32  ;;  %v727_v35 = vld [vmem:[%s3294_s3 + $0x10] sm:$0xff] }
 0x31b   : > { %v558_v38 = vsel %vm364_vm1, %v542_v34, -inf }
 0x31c   : > { %559 = vmax.xlane.f32.xlu0 %v558_v38  ;;  %v2060_v40 = vpop.f32.mrb[2].mxu1  ;;  %v555_v41 = vsel %vm364_vm1, %v537_v36, -inf }
 0x31d   : > { %v552_v42 = vadd.f32 %v2060_v40, %v2949_v37  ;;  %v546_v43 = vpop.f32.mrb[3].mxu1  ;;  %556 = vmax.xlane.f32.xlu1 %v555_v41 }
 0x31e   : > { %v547_v44 = vadd.f32 %v546_v43, %v2952_v39 }
 0x31f   : > { %v564_v45 = vsel %vm364_vm1, %v552_v42, -inf }
 0x320   : > { %v561_v46 = vsel %vm364_vm1, %v547_v44, -inf }
 0x321   : > { %562 = vmax.xlane.f32.xlu0 %v561_v46  ;;  %565 = vmax.xlane.f32.xlu1 %v564_v45 }
 0x3a9   : > { %v560_v47 = vpop.xlane.xlu0 %559 }
 0x3aa   : > { %v568_v48 = vsub.f32 %v542_v34, %v560_v47  ;;  %v557_v49 = vpop.xlane.xlu1 %556  ;;  %v2234_v34 = vpack.c.bf16 %v726_v33, %v725_v30  ;;  %v919_v30 = vld [vmem:[%s3296_s5 + $0x30] sm:$0xff]  ;;  %v920_v33 = vld [vmem:[%s3296_s5 + $0x38] sm:$0xff] }
 0x3ab   : > { %v567_v50 = vsub.f32 %v537_v36, %v557_v49  ;;  %v728_v36 = vld [vmem:[%s3294_s3 + $0x18] sm:$0xff] }
 0x3ac   : > { %v573_v51 = vmul.f32 1.442695, %v568_v48  ;;  %v2237_v38 = vpack.c.bf16 %v728_v36, %v727_v35  ;;  %v837_v35 = vsub.s32 4, %v2900_v10 }
 0x3ad   : > { %v571_v52 = vmul.f32 1.442695, %v567_v50  ;;  %v731_v50 = vsub.s32 1, %v2900_v10 }
 0x3ae   : > { %2433 = vpow2.f32 %v573_v51  ;;  %v563_v53 = vpop.xlane.xlu0 %562  ;;  %v566_v54 = vpop.xlane.xlu1 %565  ;;  %v838_v36 = vrot.slane %v2906_v12, %v837_v35 }
 0x3af   : > { %2435 = vpow2.f32 %v571_v52  ;;  %v569_v55 = vsub.f32 %v547_v44, %v563_v53  ;;  %v570_v56 = vsub.f32 %v552_v42, %v566_v54  ;;  %v732_v51 = vrot.slane %v2906_v12, %v731_v50 }
 0x3b1   : > { %v575_v57 = vmul.f32 1.442695, %v569_v55  ;;  %v577_v58 = vmul.f32 1.442695, %v570_v56 }
 0x3b3   : > { %2437 = vpow2.f32 %v575_v57 }
 0x3b4   : > { %2439 = vpow2.f32 %v577_v58 }
 0x3b8   : > { %v2434_v59 = vpop.eup %2433 }
 0x3b9   : > { %v2436_v60 = vpop.eup %2435  ;;  %v582_v61 = vsel %vm364_vm1, %v2434_v59, 0.0 }
 0x3ba   : > { %583 = vadd.xlane.f32.xlu1 %v582_v61  ;;  %v579_v62 = vsel %vm364_vm1, %v2436_v60, 0.0 }
 0x3bb   : > { %580 = vadd.xlane.f32.xlu0 %v579_v62  ;;  %v831_v62 = vld [vmem:[%s3295_s4] sm:$0xff] }
 0x3bd   : > { %v2438_v63 = vpop.eup %2437 }
 0x3be   : > { %v2440_v2 = vpop.eup %2439  ;;  %v585_v3 = vsel %vm364_vm1, %v2438_v63, 0.0 }
 0x3bf   : > { %586 = vadd.xlane.f32.xlu0 %v585_v3  ;;  %v588_v4 = vsel %vm364_vm1, %v2440_v2, 0.0  ;;  %v834_v3 = vld [vmem:[%s3295_s4 + $0x18] sm:$0xff] }
 0x3c0   : > { %589 = vadd.xlane.f32.xlu1 %v588_v4 }
 0x3d1   : > { %2409 = vrot.lane.b32.xlu1 %v2919_v21, %s3304_s17 }
 0x3d5   : > { %2404 = vrot.lane.b32.xlu0 %v2915_v18, %s3304_s17 }
 0x447   : > { %v584_v5 = vpop.xlane.xlu1 %583 }
 0x448   : > { %v581_v6 = vpop.xlane.xlu0 %580 }
 0x449   : > { %2441 = vrcp.f32 %v581_v6  ;;  %v914_v6 = vld [vmem:[%s3296_s5 + $0x8] sm:$0xff] }
 0x44a   : > { %2443 = vrcp.f32 %v584_v5  ;;  %v913_v5 = vld [vmem:[%s3296_s5] sm:$0xff] }
 0x44c   : > { %v587_v7 = vpop.xlane.xlu0 %586 }
 0x44d   : > { %v590_v9 = vpop.xlane.xlu1 %589  ;;  %2445 = vrcp.f32 %v587_v7  ;;  %v915_v7 = vld [vmem:[%s3296_s5 + $0x10] sm:$0xff] }
 0x44e   : > { %2447 = vrcp.f32 %v590_v9  ;;  %v2246_v9 = vpack.c.bf16 %v914_v6, %v913_v5 }
 0x450   : > { %v2405_v13 = vpop.permute.xlu0 %2404 }
 0x451   : > { %v2407_v14 = vunpack.i.h.bf16 %v2405_v13  ;;  %v2406_v15 = vunpack.i.l.bf16 %v2405_v13  ;;  %v2410_v16 = vpop.permute.xlu1 %2409  ;;  %v916_v13 = vld [vmem:[%s3296_s5 + $0x18] sm:$0xff] }
 0x452   : > { %v2412_v17 = vunpack.i.h.bf16 %v2410_v16  ;;  %v2411_v19 = vunpack.i.l.bf16 %v2410_v16  ;;  %v918_v16 = vld [vmem:[%s3296_s5 + $0x28] sm:$0xff] }
 0x453   : > { %v2442_v20 = vpop.eup %2441  ;;  %v2225_v22 = vpack.c.bf16 %v2407_v14, %v2406_v15  ;;  %v2249_v14 = vpack.c.bf16 %v916_v13, %v915_v7  ;;  %v917_v15 = vld [vmem:[%s3296_s5 + $0x20] sm:$0xff] }
 0x454   : > { %v595_v21 = vmul.f32 %v2442_v20, %v2436_v60  ;;  %v2229_v23 = vpack.c.bf16 %v2412_v17, %v2411_v19  ;;  %v2444_v18 = vpop.eup %2443  ;;  %v2252_v17 = vpack.c.bf16 %v918_v16, %v917_v15 }
 0x455   : > { %2226 = vmatprep.subr.bf16.mxu0 %v2225_v22  ;;  %v596_v26 = vmul.f32 %v2444_v18, %v2434_v59 }
 0x456   : > { %2228 = vmatpush3.bf16.msra.mxu0 %v2225_v22  ;;  %2069 = vmatprep.mubr.msk.f32.mxu0 %vm364_vm1, %v595_v21  ;;  %v823_v21 = vsub.s32 2, %v2900_v10 }
 0x457   : > { %2230 = vmatprep.subr.bf16.mxu0 %v2229_v23  ;;  %v2446_v24 = vpop.eup %2445 }
 0x458   : > { %v2448_v27 = vpop.eup %2447  ;;  %v597_v28 = vmul.f32 %v2446_v24, %v2438_v63  ;;  %v832_v63 = vld [vmem:[%s3295_s4 + $0x8] sm:$0xff]  ;;  %v824_v18 = vrot.slane %v2906_v12, %v823_v21 }
 0x459   : > { %v598_v29 = vmul.f32 %v2448_v27, %v2440_v2  ;;  %v2240_v2 = vpack.c.bf16 %v832_v63, %v831_v62 }
 0x45a   : > { %2232 = vmatpush3.bf16.msra.mxu0 %v2229_v23  ;;  %v828_v23 = vsub.s32 3, %v2900_v10 }
 0x45b   : > { %2233 = vmatprep.subr.bf16.mxu0 %v2640_v0  ;;  %2241 = vmatpush3.bf16.msra.mxu1 %v2240_v2 }
 0x45c   : > { %2242 = vmatprep.subr.bf16.mxu1 %v2640_v0 }
 0x45d   : > { %2070 = vmatmul.mubr.msk.f32.vlgmr.msra.gmra.mrb[2].mxu0 %vm364_vm1, %v596_v26  ;;  %v829_v26 = vrot.slane %v2906_v12, %v828_v23 }
 0x45e   : > { %2072 = vmatprep.mubr.msk.f32.mxu0 %vm364_vm1, %v597_v28  ;;  %2235 = vmatpush3.bf16.msra.mxu0 %v2234_v34  ;;  %v2255_v34 = vpack.c.bf16 %v920_v33, %v919_v30 }
 0x45f   : > { %2236 = vmatprep.subr.bf16.mxu0 %v2640_v0 }
 0x461   : > { %2073 = vmatmul.mubr.msk.f32.gmra.mrb[4].mxu0 %vm364_vm1, %v598_v29 }
 0x462   : > { %2083 = vmatprep.mubr.msk.f32.mxu0 %vm2641_vm0, %v2642_v1  ;;  %2238 = vmatpush3.bf16.msra.mxu0 %v2237_v38 }
 0x463   : > { %2245 = vmatprep.subr.bf16.mxu0 %v2640_v0 }
 0x530   : > { %v2071_v40 = vpop.f32.mrb[2].mxu0 }
 0x531   : > { %709 = vrot.lane.b32.xlu1 %v2071_v40, %s3308_s19  ;;  %v689_v41 = vpop.f32.mrb[3].mxu0  ;;  %s3325_s19 = smov 96  }
 0x534   : > { %v2074_v42 = vpop.f32.mrb[4].mxu0 }
 0x535   : > { %717 = vrot.lane.b32.xlu1 %v2074_v42, %s3307_s16  ;;  %v699_v43 = vpop.f32.mrb[5].mxu0 }
 0x536   : > { %713 = vrot.lane.b32.xlu0 %v699_v43, %s3306_s18  ;;  %v923_v43 = vsub.s32 5, %v2900_v10  ;;  %s3324_s18 = smov 104  }
 0x5a3   : > { %v710_v44 = vpop.permute.xlu1 %709 }
 0x5a4   : > { %v720_v45 = vsel %vm453_vm2, %v689_v41, %v710_v44  ;;  %v924_v44 = vrot.slane %v2906_v12, %v923_v43 }
 0x5a7   : > { %v718_v47 = vpop.permute.xlu1 %717 }
 0x5a8   : > { %v714_v46 = vpop.permute.xlu0 %713 }
 0x5a9   : > { %v722_v48 = vsel %vm721_vm4, %v720_v45, %v714_v46 }
 0x5aa   : > { %v724_v49 = vsel %vm723_vm5, %v722_v48, %v718_v47 }
 0x5ab   : > { %2084 = vmatmul.mubr.msk.f32.vlgmr.msra.gmra.mrb[6].mxu0 %vm364_vm1, %v724_v49 }
 0x5ac   : > { %2113 = vmatprep.mubr.msk.f32.mxu0 %vm2641_vm0, %v2642_v1  ;;  %2247 = vmatpush3.bf16.msra.mxu0 %v2246_v9 }
 0x5ad   : > { %2248 = vmatprep.subr.bf16.mxu0 %v2640_v0 }
 0x5b0   : > { %2250 = vmatpush3.bf16.msra.mxu0 %v2249_v14  ;;  %v3095_v14 = vld [vmem:[%s3297_s6 + $0x8] sm:$0xff] }
 0x5b1   : > { %2251 = vmatprep.subr.bf16.mxu0 %v2640_v0  ;;  %v1033_v15 = vrot.slane %v3095_v14, %v362_v11 }
 0x5b4   : > { %2253 = vmatpush3.bf16.msra.mxu0 %v2252_v17 }
 0x5b5   : > { %2254 = vmatprep.subr.bf16.mxu0 %v2640_v0 }
 0x5b8   : > { %2256 = vmatpush3.bf16.msra.mxu0 %v2255_v34 }
 0x67e   : > { %v802_v52 = vpop.f32.mrb[6].mxu0 }
 0x67f   : > { %v803_v53 = vadd.f32 %v802_v52, %v732_v51  ;;  %v2085_v54 = vpop.f32.mrb[7].mxu0 }
 0x681   : > { %v806_v55 = vadd.f32 %v803_v53, %v2896_v8  ;;  %v833_v8 = vld [vmem:[%s3295_s4 + $0x10] sm:$0xff] }
 0x682   : > { %v2243_v4 = vpack.c.bf16 %v834_v3, %v833_v8  ;;  %v1015_v8 = vsub.s32 6, %v2900_v10  ;;  %v1020_v3 = vsub.s32 7, %v2900_v10 }
 0x683   : > { %v807_v56 = vsel %vm364_vm1, %v806_v55, 0.0 }
 0x684   : > { %808 = vadd.xlane.f32.xlu0 %v807_v56  ;;  %2244 = vmatpush3.bf16.msra.mxu1 %v2243_v4  ;;  %v1910_v56 = vld [vmem:[%s3293_s2 + $0x20] sm:$0xff]  ;;  %v1016_v4 = vrot.slane %v2906_v12, %v1015_v8  ;;  %v1021_v7 = vrot.slane %v2906_v12, %v1020_v3 }
 0x685   : > { %2257 = vmatprep.subr.bf16.mxu1 %v2640_v0 }
 0x711   : > { %v809_v57 = vpop.xlane.xlu0 %808 }
 0x712   : > { %v811_v58 = vmul.f32 0.03125, %v809_v57  ;;  %v1911_v57 = vld [vmem:[%s3293_s2 + $0x28] sm:$0xff] }
 0x714   : > { %v812_v59 = vsub.f32 %v806_v55, %v811_v58  ;;  %v2258_v58 = vpack.c.bf16 %v1911_v57, %v1910_v56 }
 0x716   : > { %v813_v60 = vmul.f32 %v812_v59, %v812_v59 }
 0x718   : > { %v814_v61 = vsel %vm364_vm1, %v813_v60, 0.0  ;;  %v1913_v60 = vld [vmem:[%s3293_s2 + $0x38] sm:$0xff] }
 0x719   : > { %815 = vadd.xlane.f32.xlu1 %v814_v61 }
 0x7a6   : > { %v816_v19 = vpop.xlane.xlu1 %815 }
 0x7a7   : > { %v817_v20 = vmul.f32 0.03125, %v816_v19 }
 0x7a9   : > { %v818_v22 = vadd.f32 1e-05, %v817_v20 }
 0x7ab   : > { %2449 = vrsqrt.f32 %v818_v22 }
 0x7b5   : > { %v2450_v24 = vpop.eup %2449 }
 0x7b6   : > { %v820_v27 = vmul.f32 %v2450_v24, %v812_v59  ;;  %v1912_v59 = vld [vmem:[%s3293_s2 + $0x30] sm:$0xff] }
 0x7b7   : > { %v2261_v61 = vpack.c.bf16 %v1913_v60, %v1912_v59 }
 0x7b8   : > { %v825_v28 = vmul.f32 %v824_v18, %v820_v27 }
 0x7ba   : > { %v830_v29 = vadd.f32 %v829_v26, %v825_v28 }
 0x7bc   : > { %2095 = vmatmul.mubr.msk.f32.vlgmr.msra.gmra.mrb[4].mxu1 %vm364_vm1, %v830_v29 }
 0x7bd   : > { %2124 = vmatprep.mubr.msk.f32.mxu1 %vm2641_vm0, %v2642_v1  ;;  %2259 = vmatpush3.bf16.msra.mxu1 %v2258_v58 }
 0x7be   : > { %2260 = vmatprep.subr.bf16.mxu1 %v2640_v0 }
 0x7c1   : > { %2262 = vmatpush3.bf16.msra.mxu1 %v2261_v61 }
 0x88f   : > { %v908_v38 = vpop.f32.mrb[4].mxu1 }
 0x890   : > { %v909_v40 = vadd.f32 %v908_v38, %v838_v36  ;;  %v2096_v41 = vpop.f32.mrb[5].mxu1 }
 0x892   : > { %v912_v42 = vmax.f32 %v909_v40, 0.0 }
 0x894   : > { %2114 = vmatmul.mubr.msk.f32.vlgmr.msra.gmra.mrb[8].mxu0 %vm925_vm6, %v912_v42 }
 0x967   : > { %v995_v45 = vpop.f32.mrb[8].mxu0 }
 0x968   : > { %v996_v46 = vadd.f32 %v995_v45, %v924_v44  ;;  %v2115_v47 = vpop.f32.mrb[9].mxu0 }
 0x96a   : > { %v999_v48 = vadd.f32 %v996_v46, %v830_v29 }
 0x96c   : > { %v1000_v49 = vsel %vm364_vm1, %v999_v48, 0.0 }
 0x96d   : > { %1001 = vadd.xlane.f32.xlu0 %v1000_v49 }
 0x9fa   : > { %v1002_v51 = vpop.xlane.xlu0 %1001 }
 0x9fb   : > { %v1003_v52 = vmul.f32 0.03125, %v1002_v51 }
 0x9fd   : > { %v1004_v53 = vsub.f32 %v999_v48, %v1003_v52 }
 0x9ff   : > { %v1005_v54 = vmul.f32 %v1004_v53, %v1004_v53 }
 0xa01   : > { %v1006_v55 = vsel %vm364_vm1, %v1005_v54, 0.0 }
 0xa02   : > { %1007 = vadd.xlane.f32.xlu0 %v1006_v55 }
 0xa8f   : > { %v1008_v62 = vpop.xlane.xlu0 %1007 }
 0xa90   : > { %v1009_v63 = vmul.f32 0.03125, %v1008_v62 }
 0xa92   : > { %v1010_v2 = vadd.f32 1e-05, %v1009_v63 }
 0xa94   : > { %2451 = vrsqrt.f32 %v1010_v2 }
 0xa9e   : > { %v2452_v5 = vpop.eup %2451 }
 0xa9f   : > { %v1012_v6 = vmul.f32 %v2452_v5, %v1004_v53 }
 0xaa1   : > { %v1017_v9 = vmul.f32 %v1016_v4, %v1012_v6 }
 0xaa3   : > { %v3088_v13 = vadd.f32 %v1021_v7, %v1017_v9 }
 0xaa5   : > { %2125 = vmatmul.mubr.msk.f32.vlgmr.msra.gmra.mrb[6].mxu1 %vm364_vm1, %v3088_v13 }
 0xb78   : > { %v1103_v16 = vpop.f32.mrb[6].mxu1 }
 0xb79   : > { %v1104_v17 = vadd.f32 %v1103_v16, %v1033_v15  ;;  %v2126_v19 = vpop.f32.mrb[7].mxu1 }
 0xb7b   : > { %1110 = vrot.lane.b32.xlu0 %v1104_v17, %s2645_s26  ;;  %1108 = vrot.lane.b32.xlu1 %v1104_v17, %s2644_s13  ;;  %s3326_s13 = smov 64   ;;  %s3330_s26 = sshll.u32 %s2866_s21, 3 }
 0xb7c   : > { %2135 = vmatprep.mubr.msk.f32.mxu1 %vm453_vm2, %v1104_v17  ;;  %s349_s16 = scalar_lea.vmem [#allocation8], %s3330_s26 }
 0xb7d   : > { %s1792_s15 = sshll.u32 %s349_s16, 4  ;;  %s3249_s15 = int_to_ptr.vmem [resolvable:$true] %s1792_s15 }
 0xb7e   : > { %s2563_s25 = scalar_lea.vmem %s3249_s15, 128 }
 0xb7f   : > { %1112 = vrot.lane.b32.xlu1 %v1104_v17, %s3324_s18  ;;  %s3328_s18 = smov 24   ;;  %p2564_p11 = scmp.ne.s32.totalorder %s3249_s15, %s2563_s25 }
 0xb81   : > { %p2565_p1 = pnand %p2564_p11, %p3331_p0 }
 0xb83   : > { %p2566_p3 = pneg %p2565_p1 }
 0xbed   : > { %v1109_v12 = vpop.permute.xlu1 %1108  ;;  %v1111_v22 = vpop.permute.xlu0 %1110 }
 0xbee   : > { %v3104_v20 = vpack.i.bf16 %v1109_v12, %v1104_v17 }
 0xbf0   : > { %2414 = vrot.lane.b32.xlu1 %v3104_v20, %s3325_s19 }
 0xbf1   : > { %v1113_v18 = vpop.permute.xlu1 %1112 }
 0xbf2   : > { %v2418_v11 = vpack.i.bf16 %v1113_v18, %v1111_v22 }
 0xbf4   : > { %2419 = vrot.lane.b32.xlu0 %v2418_v11, %s3325_s19  ;;  %s3329_s19 = smov 16  }
 0xc62   : > { %v2415_v24 = vpop.permute.xlu1 %2414 }
 0xc63   : > { %v2417_v26 = vunpack.i.h.bf16 %v2415_v24  ;;  %v2416_v27 = vunpack.i.l.bf16 %v2415_v24 }
 0xc65   : > { %v2263_v28 = vpack.c.bf16 %v2417_v26, %v2416_v27 }
 0xc66   : > { %v2420_v29 = vpop.permute.xlu0 %2419 }
 0xc67   : > { %v2422_v30 = vunpack.i.h.bf16 %v2420_v29  ;;  %v2421_v33 = vunpack.i.l.bf16 %v2420_v29  ;;  %2265 = vmatprep.subr.msk.bf16.mxu1 %vm2925_vm3, %v2263_v28 }
 0xc68   : > { %2268 = vmatpush3.bf16.xpose.msk.msra.mxu1 %vm2925_vm3, %v2263_v28 }
 0xc69   : > { %v2269_v34 = vpack.c.bf16 %v2422_v30, %v2421_v33 }
 0xc6b   : > { %2271 = vmatprep.subr.msk.bf16.mxu1 %vm2925_vm3, %v2269_v34 }
 0xc70   : > { %2274 = vmatpush3.bf16.xpose.msk.msra.mxu1 %vm2925_vm3, %v2269_v34 }
 0xc71   : > { %2289 = vmatprep.subr.bf16.mxu1 %v2640_v0 }
 0xc77   : > { %2136 = vmatmul.mubr.msk.f32.vlgmr.msra.gmra.mrb[8].mxu1 %vm453_vm2, %v1109_v12 }
 0xc78   : > { %2138 = vmatprep.mubr.msk.f32.mxu1 %vm453_vm2, %v1111_v22 }
 0xc7b   : > { %2139 = vmatmul.mubr.msk.f32.gmra.mrb[10].mxu1 %vm453_vm2, %v1113_v18 }
 0xc7c   : > { %2174 = vmatprep.mubr.msk.f32.mxu1 %vm2641_vm0, %v2642_v1 }
 0xd4a   : > { %v2137_v36 = vpop.f32.mrb[8].mxu1 }
 0xd4b   : > { %v1210_v38 = vadd.f32 %v2137_v36, %v2943_v31  ;;  %v1204_v40 = vpop.f32.mrb[9].mxu1  ;;  %v1927_v36 = vld [vmem:[%s3294_s3 + $0x20] sm:$0xff] }
 0xd4c   : > { %v1205_v41 = vadd.f32 %v1204_v40, %v2945_v32 }
 0xd4d   : > { %v1226_v25 = vsel %vm364_vm1, %v1210_v38, -inf }
 0xd4e   : > { %1227 = vmax.xlane.f32.xlu0 %v1226_v25  ;;  %v2140_v42 = vpop.f32.mrb[10].mxu1  ;;  %v1223_v44 = vsel %vm364_vm1, %v1205_v41, -inf  ;;  %v1930_v25 = vld [vmem:[%s3294_s3 + $0x38] sm:$0xff] }
 0xd4f   : > { %v1220_v45 = vadd.f32 %v2140_v42, %v2949_v37  ;;  %v1214_v46 = vpop.f32.mrb[11].mxu1  ;;  %1224 = vmax.xlane.f32.xlu1 %v1223_v44 }
 0xd50   : > { %v1215_v47 = vadd.f32 %v1214_v46, %v2952_v39 }
 0xd51   : > { %v1232_v48 = vsel %vm364_vm1, %v1220_v45, -inf }
 0xd52   : > { %v1229_v49 = vsel %vm364_vm1, %v1215_v47, -inf }
 0xd53   : > { %1230 = vmax.xlane.f32.xlu0 %v1229_v49  ;;  %1233 = vmax.xlane.f32.xlu1 %v1232_v48 }
 0xddb   : > { %v1228_v31 = vpop.xlane.xlu0 %1227 }
 0xddc   : > { %v1236_v32 = vsub.f32 %v1210_v38, %v1228_v31  ;;  %v1225_v51 = vpop.xlane.xlu1 %1224  ;;  %v1928_v38 = vld [vmem:[%s3294_s3 + $0x28] sm:$0xff] }
 0xddd   : > { %v1235_v52 = vsub.f32 %v1205_v41, %v1225_v51  ;;  %v2284_v40 = vpack.c.bf16 %v1928_v38, %v1927_v36  ;;  %v1929_v41 = vld [vmem:[%s3294_s3 + $0x30] sm:$0xff] }
 0xdde   : > { %v1241_v53 = vmul.f32 1.442695, %v1236_v32  ;;  %v2287_v42 = vpack.c.bf16 %v1930_v25, %v1929_v41 }
 0xddf   : > { %v1239_v54 = vmul.f32 1.442695, %v1235_v52 }
 0xde0   : > { %2453 = vpow2.f32 %v1241_v53  ;;  %v1231_v55 = vpop.xlane.xlu0 %1230  ;;  %v1234_v56 = vpop.xlane.xlu1 %1233  ;;  %v1399_v53 = vrot.slane %v3095_v14, %v731_v50  ;;  %v1933_v50 = vld [vmem:[%s3295_s4 + $0x28] sm:$0xff] }
 0xde1   : > { %2455 = vpow2.f32 %v1239_v54  ;;  %v1237_v37 = vsub.f32 %v1215_v47, %v1231_v55  ;;  %v1238_v57 = vsub.f32 %v1220_v45, %v1234_v56 }
 0xde3   : > { %v1243_v58 = vmul.f32 1.442695, %v1237_v37  ;;  %v1245_v39 = vmul.f32 1.442695, %v1238_v57 }
 0xde5   : > { %2457 = vpow2.f32 %v1243_v58 }
 0xde6   : > { %2459 = vpow2.f32 %v1245_v39 }
 0xdea   : > { %v2454_v59 = vpop.eup %2453 }
 0xdeb   : > { %v2456_v60 = vpop.eup %2455  ;;  %v1250_v61 = vsel %vm364_vm1, %v2454_v59, 0.0 }
 0xdec   : > { %1251 = vadd.xlane.f32.xlu1 %v1250_v61  ;;  %v1247_v62 = vsel %vm364_vm1, %v2456_v60, 0.0 }
 0xded   : > { %1248 = vadd.xlane.f32.xlu0 %v1247_v62  ;;  %v1932_v62 = vld [vmem:[%s3295_s4 + $0x20] sm:$0xff] }
 0xdef   : > { %v2458_v63 = vpop.eup %2457 }
 0xdf0   : > { %v2460_v2 = vpop.eup %2459  ;;  %v1253_v4 = vsel %vm364_vm1, %v2458_v63, 0.0 }
 0xdf1   : > { %1254 = vadd.xlane.f32.xlu0 %v1253_v4  ;;  %v1256_v5 = vsel %vm364_vm1, %v2460_v2, 0.0 }
 0xdf2   : > { %1257 = vadd.xlane.f32.xlu1 %v1256_v5  ;;  %v1937_v5 = vld [vmem:[%s3296_s5 + $0x40] sm:$0xff] }
 0xe03   : > { %2429 = vrot.lane.b32.xlu1 %v2418_v11, %s3326_s13 }
 0xe07   : > { %2424 = vrot.lane.b32.xlu0 %v3104_v20, %s3326_s13  ;;  %s1948_s13 = sshll.u32 %s2718_s9, 7  ;;  %s2651_s9 = smov [#allocation8]  }
 0xe08   : > { %s3247_s24 = scalar_lea.hbm %s3299_s8, %s1948_s13 }
 0xe79   : > { %v1252_v6 = vpop.xlane.xlu1 %1251 }
 0xe7a   : > { %v1249_v7 = vpop.xlane.xlu0 %1248 }
 0xe7b   : > { %2461 = vrcp.f32 %v1249_v7  ;;  %v1939_v7 = vld [vmem:[%s3296_s5 + $0x50] sm:$0xff] }
 0xe7c   : > { %2463 = vrcp.f32 %v1252_v6  ;;  %v1938_v6 = vld [vmem:[%s3296_s5 + $0x48] sm:$0xff] }
 0xe7e   : > { %v1255_v9 = vpop.xlane.xlu0 %1254 }
 0xe7f   : > { %v1258_v15 = vpop.xlane.xlu1 %1257  ;;  %2465 = vrcp.f32 %v1255_v9  ;;  %v2296_v9 = vpack.c.bf16 %v1938_v6, %v1937_v5 }
 0xe80   : > { %2467 = vrcp.f32 %v1258_v15  ;;  %v1940_v15 = vld [vmem:[%s3296_s5 + $0x58] sm:$0xff] }
 0xe82   : > { %v2425_v16 = vpop.permute.xlu0 %2424 }
 0xe83   : > { %v2427_v17 = vunpack.i.h.bf16 %v2425_v16  ;;  %v2426_v19 = vunpack.i.l.bf16 %v2425_v16  ;;  %v2430_v12 = vpop.permute.xlu1 %2429  ;;  %v2299_v16 = vpack.c.bf16 %v1940_v15, %v1939_v7 }
 0xe84   : > { %v2432_v22 = vunpack.i.h.bf16 %v2430_v12  ;;  %v2431_v18 = vunpack.i.l.bf16 %v2430_v12 }
 0xe85   : > { %v2462_v24 = vpop.eup %2461  ;;  %v2275_v26 = vpack.c.bf16 %v2427_v17, %v2426_v19  ;;  %v1941_v17 = vld [vmem:[%s3296_s5 + $0x60] sm:$0xff]  ;;  %v1942_v19 = vld [vmem:[%s3296_s5 + $0x68] sm:$0xff] }
 0xe86   : > { %v1263_v11 = vmul.f32 %v2462_v24, %v2456_v60  ;;  %v2279_v27 = vpack.c.bf16 %v2432_v22, %v2431_v18  ;;  %v2464_v20 = vpop.eup %2463  ;;  %v2302_v12 = vpack.c.bf16 %v1942_v19, %v1941_v17 }
 0xe87   : > { %2276 = vmatprep.subr.bf16.mxu0 %v2275_v26  ;;  %v1264_v29 = vmul.f32 %v2464_v20, %v2454_v59 }
 0xe88   : > { %2278 = vmatpush3.bf16.msra.mxu0 %v2275_v26  ;;  %2149 = vmatprep.mubr.msk.f32.mxu0 %vm364_vm1, %v1263_v11  ;;  %v1490_v26 = vrot.slane %v3095_v14, %v823_v21  ;;  %v1944_v21 = vld [vmem:[%s3296_s5 + $0x78] sm:$0xff] }
 0xe89   : > { %2280 = vmatprep.subr.bf16.mxu0 %v2279_v27  ;;  %v2466_v28 = vpop.eup %2465 }
 0xe8a   : > { %v2468_v30 = vpop.eup %2467  ;;  %v1265_v33 = vmul.f32 %v2466_v28, %v2458_v63  ;;  %v2290_v63 = vpack.c.bf16 %v1933_v50, %v1932_v62 }
 0xe8b   : > { %v1266_v34 = vmul.f32 %v2468_v30, %v2460_v2  ;;  %v1935_v2 = vld [vmem:[%s3295_s4 + $0x38] sm:$0xff]  ;;  %v1943_v30 = vld [vmem:[%s3296_s5 + $0x70] sm:$0xff] }
 0xe8c   : > { %2282 = vmatpush3.bf16.msra.mxu0 %v2279_v27  ;;  %2291 = vmatpush3.bf16.msra.mxu1 %v2290_v63  ;;  %v1495_v27 = vrot.slane %v3095_v14, %v828_v23  ;;  %v1505_v23 = vrot.slane %v3095_v14, %v837_v35 }
 0xe8d   : > { %2283 = vmatprep.subr.bf16.mxu0 %v2640_v0  ;;  %2292 = vmatprep.subr.bf16.mxu1 %v2640_v0 }
 0xe8f   : > { %2150 = vmatmul.mubr.msk.f32.vlgmr.msra.gmra.mrb[10].mxu0 %vm364_vm1, %v1264_v29 }
 0xe90   : > { %2152 = vmatprep.mubr.msk.f32.mxu0 %vm364_vm1, %v1265_v33  ;;  %2285 = vmatpush3.bf16.msra.mxu0 %v2284_v40  ;;  %v2305_v33 = vpack.c.bf16 %v1944_v21, %v1943_v30 }
 0xe91   : > { %2286 = vmatprep.subr.bf16.mxu0 %v2640_v0 }
 0xe93   : > { %2153 = vmatmul.mubr.msk.f32.gmra.mrb[12].mxu0 %vm364_vm1, %v1266_v34 }
 0xe94   : > { %2163 = vmatprep.mubr.msk.f32.mxu0 %vm2641_vm0, %v2642_v1  ;;  %2288 = vmatpush3.bf16.msra.mxu0 %v2287_v42 }
 0xe95   : > { %2295 = vmatprep.subr.bf16.mxu0 %v2640_v0 }
 0xf62   : > { %v2151_v44 = vpop.f32.mrb[10].mxu0 }
 0xf63   : > { %1377 = vrot.lane.b32.xlu1 %v2151_v44, %s3327_s14  ;;  %v1357_v45 = vpop.f32.mrb[11].mxu0  ;;  %s2567_s14 = sshll.u32 %s2651_s9, 4  ;;  %s2568_s14 = int_to_ptr.vmem [resolvable:$false] %s2567_s14 }
 0xf64   : > { %p2570_p7 = scmp.lt.s32.totalorder %s3249_s15, %s2568_s14 }
 0xf66   : > { %v2154_v46 = vpop.f32.mrb[12].mxu0 }
 0xf67   : > { %1385 = vrot.lane.b32.xlu1 %v2154_v46, %s3328_s18  ;;  %v1367_v47 = vpop.f32.mrb[13].mxu0  ;;  %s2569_s18 = scalar_lea.vmem %s2568_s14, 256 }
 0xf68   : > { %1381 = vrot.lane.b32.xlu0 %v1367_v47, %s3329_s19  ;;  %p2571_p9 = scmp.lt.s32.totalorder %s2569_s18, %s2563_s25 }
 0xf6a   : > { %p2572_p12 = por %p2571_p9, %p2570_p7 }
 0xf6c   : > { %p2573_p2 = pnand %p2572_p12, %p2566_p3 }
 0xfd5   : > { %v1378_v48 = vpop.permute.xlu1 %1377 }
 0xfd6   : > { %v1388_v49 = vsel %vm453_vm2, %v1357_v45, %v1378_v48 }
 0xfd9   : > { %v1386_v32 = vpop.permute.xlu1 %1385 }
 0xfda   : > { %v1382_v31 = vpop.permute.xlu0 %1381 }
 0xfdb   : > { %v1389_v51 = vsel %vm721_vm4, %v1388_v49, %v1382_v31  ;;  %v1690_v31 = vld [vmem:[#allocation7] sm:$0xff] }
 0xfdc   : > { %v1390_v52 = vsel %vm723_vm5, %v1389_v51, %v1386_v32  ;;  %v1691_v32 = vld [vmem:[#allocation7 + $0x8] sm:$0xff] }
 0xfdd   : > { %2164 = vmatmul.mubr.msk.f32.vlgmr.msra.gmra.mrb[14].mxu0 %vm364_vm1, %v1390_v52  ;;  %v2308_v51 = vpack.c.bf16 %v1691_v32, %v1690_v31  ;;  %v1692_v52 = vld [vmem:[#allocation7 + $0x10] sm:$0xff] }
 0xfde   : > { %2193 = vmatprep.mubr.msk.f32.mxu0 %vm2641_vm0, %v2642_v1  ;;  %2297 = vmatpush3.bf16.msra.mxu0 %v2296_v9 }
 0xfdf   : > { %2298 = vmatprep.subr.bf16.mxu0 %v2640_v0 }
 0xfe2   : > { %2300 = vmatpush3.bf16.msra.mxu0 %v2299_v16 }
 0xfe3   : > { %2301 = vmatprep.subr.bf16.mxu0 %v2640_v0 }
 0xfe6   : > { %2303 = vmatpush3.bf16.msra.mxu0 %v2302_v12 }
 0xfe7   : > { %2304 = vmatprep.subr.bf16.mxu0 %v2640_v0 }
 0xfea   : > { %2306 = vmatpush3.bf16.msra.mxu0 %v2305_v33 }
0x10b0   : > { %v1469_v54 = vpop.f32.mrb[14].mxu0 }
0x10b1   : > { %v1470_v55 = vadd.f32 %v1469_v54, %v1399_v53  ;;  %v2165_v56 = vpop.f32.mrb[15].mxu0 }
0x10b3   : > { %v1473_v37 = vadd.f32 %v1470_v55, %v3088_v13  ;;  %v1934_v13 = vld [vmem:[%s3295_s4 + $0x30] sm:$0xff] }
0x10b4   : > { %v2293_v4 = vpack.c.bf16 %v1935_v2, %v1934_v13 }
0x10b5   : > { %v1474_v57 = vsel %vm364_vm1, %v1473_v37, 0.0 }
0x10b6   : > { %1475 = vadd.xlane.f32.xlu0 %v1474_v57  ;;  %2294 = vmatpush3.bf16.msra.mxu1 %v2293_v4 }
0x10b7   : > { %2307 = vmatprep.subr.bf16.mxu1 %v2640_v0 }
0x1143   : > { %v1476_v58 = vpop.xlane.xlu0 %1475 }
0x1144   : > { %v1477_v39 = vmul.f32 0.03125, %v1476_v58 }
0x1146   : > { %v1478_v59 = vsub.f32 %v1473_v37, %v1477_v39  ;;  %v1683_v37 = vrot.slane %v3095_v14, %v1015_v8  ;;  %v1688_v39 = vrot.slane %v3095_v14, %v1020_v3 }
0x1148   : > { %v1479_v60 = vmul.f32 %v1478_v59, %v1478_v59 }
0x114a   : > { %v1480_v61 = vsel %vm364_vm1, %v1479_v60, 0.0 }
0x114b   : > { %1481 = vadd.xlane.f32.xlu1 %v1480_v61 }
0x11d8   : > { %v1482_v22 = vpop.xlane.xlu1 %1481 }
0x11d9   : > { %v1483_v18 = vmul.f32 0.03125, %v1482_v22 }
0x11db   : > { %v1484_v24 = vadd.f32 1e-05, %v1483_v18 }
0x11dd   : > { %2469 = vrsqrt.f32 %v1484_v24 }
0x11e7   : > { %v2470_v11 = vpop.eup %2469 }
0x11e8   : > { %v1486_v20 = vmul.f32 %v2470_v11, %v1478_v59 }
0x11ea   : > { %v1491_v28 = vmul.f32 %v1490_v26, %v1486_v20 }
0x11ec   : > { %v1496_v29 = vadd.f32 %v1495_v27, %v1491_v28 }
0x11ee   : > { %2175 = vmatmul.mubr.msk.f32.vlgmr.msra.gmra.mrb[12].mxu1 %vm364_vm1, %v1496_v29 }
0x11ef   : > { %2204 = vmatprep.mubr.msk.f32.mxu1 %vm2641_vm0, %v2642_v1  ;;  %v1592_v1 = vrot.slane %v3095_v14, %v923_v43  ;;  %2309 = vmatpush3.bf16.msra.mxu1 %v2308_v51  ;;  %v1693_v43 = vld [vmem:[#allocation7 + $0x18] sm:$0xff] }
0x11f0   : > { %2310 = vmatprep.subr.bf16.mxu1 %v2640_v0  ;;  %v2311_v53 = vpack.c.bf16 %v1693_v43, %v1692_v52 }
0x11f3   : > { %2312 = vmatpush3.bf16.msra.mxu1 %v2311_v53 }
0x12c1   : > { %v1575_v34 = vpop.f32.mrb[12].mxu1 }
0x12c2   : > { %v1576_v36 = vadd.f32 %v1575_v34, %v1505_v23  ;;  %v2176_v38 = vpop.f32.mrb[13].mxu1 }
0x12c4   : > { %v1579_v40 = vmax.f32 %v1576_v36, 0.0 }
0x12c6   : > { %2194 = vmatmul.mubr.msk.f32.vlgmr.msra.gmra.mrb[16].mxu0 %vm925_vm6, %v1579_v40 }
0x1399   : > { %v1662_v41 = vpop.f32.mrb[16].mxu0 }
0x139a   : > { %v1663_v25 = vadd.f32 %v1662_v41, %v1592_v1  ;;  %v2195_v42 = vpop.f32.mrb[17].mxu0 }
0x139c   : > { %v1666_v44 = vadd.f32 %v1663_v25, %v1496_v29 }
0x139e   : > { %v1667_v45 = vsel %vm364_vm1, %v1666_v44, 0.0 }
0x139f   : > { %1668 = vadd.xlane.f32.xlu0 %v1667_v45 }
0x142c   : > { %v1669_v46 = vpop.xlane.xlu0 %1668 }
0x142d   : > { %v1670_v47 = vmul.f32 0.03125, %v1669_v46 }
0x142f   : > { %v1671_v35 = vsub.f32 %v1666_v44, %v1670_v47 }
0x1431   : > { %v1672_v48 = vmul.f32 %v1671_v35, %v1671_v35 }
0x1433   : > { %v1673_v49 = vsel %vm364_vm1, %v1672_v48, 0.0 }
0x1434   : > { %1674 = vadd.xlane.f32.xlu0 %v1673_v49 }
0x14c1   : > { %v1675_v54 = vpop.xlane.xlu0 %1674 }
0x14c2   : > { %v1676_v55 = vmul.f32 0.03125, %v1675_v54 }
0x14c4   : > { %v1677_v56 = vadd.f32 1e-05, %v1676_v55 }
0x14c6   : > { %2471 = vrsqrt.f32 %v1677_v56 }
0x14d0   : > { %v2472_v57 = vpop.eup %2471 }
0x14d1   : > { %v1679_v58 = vmul.f32 %v2472_v57, %v1671_v35 }
0x14d3   : > { %v1684_v59 = vmul.f32 %v1683_v37, %v1679_v58 }
0x14d5   : > { %v1689_v0 = vadd.f32 %v1688_v39, %v1684_v59 }
0x14d7   : > { %2205 = vmatmul.mubr.msk.f32.vlgmr.msra.gmra.mrb[14].mxu1 %vm364_vm1, %v1689_v0 }
0x15aa   : > { %v1763_v60 = vpop.f32.mrb[14].mxu1 }
0x15ab   : > { %1767 = vmax.xlane.f32.xlu1 %v1763_v60  ;;  %v2206_v61 = vpop.f32.mrb[15].mxu1 }
0x1638   : > { %v1768_v62 = vpop.xlane.xlu1 %1767 }
0x1639   : > { %v1769_v50 = vsub.f32 %v1763_v60, %v1768_v62 }
0x163b   : > { %v1770_v63 = vmul.f32 1.442695, %v1769_v50 }
0x163d   : > { %2473 = vpow2.f32 %v1770_v63 }
0x1647   : > { %v2474_v8 = vpop.eup %2473 }
0x1648   : > { %1772 = vadd.xlane.f32.xlu0 %v2474_v8 }
0x16d5   : > { %v1773_v10 = vpop.xlane.xlu0 %1772 }
0x16d6   : > { %2475 = vlog2.f32 %v1773_v10 }
0x16e0   : > { %v2476_v3 = vpop.eup %2475 }
0x16e1   : > { %v1775_v14 = vmul.f32 0.6931472, %v2476_v3 }
0x16e3   : > { %v1776_v13 = vsub.f32 %v1769_v50, %v1775_v14 }
0x16e5   : > { %1777 = vst [vmem:[%s349_s16] sm:$0xff] %v1776_v13 }
0x16e6   : > { %2576 = shalt.err (!%p2573_p2)
}
0x16e7   : > { %s2577_s21 = scalar_lea.hbm %s3247_s24, 128  ;;  %s2581_s26 = scalar_lea.hbm %s3299_s8, 256 }
0x16e8   : > { %p2578_p13 = scmp.ne.s32.totalorder %s3247_s24, %s2577_s21  ;;  %p2582_p4 = scmp.lt.u32.totalorder %s3247_s24, %s3299_s8 }
0x16e9   : > { %p2583_p5 = scmp.lt.u32.totalorder %s2581_s26, %s2577_s21  ;;  %p2585_p11 = scmp.lt.u32.totalorder %s2577_s21, %s3247_s24 }
0x16ea   : > { %p2579_p6 = pnand %p2578_p13, %p3331_p0 }
0x16eb   : > { %p2584_p8 = por %p2583_p5, %p2582_p4 }
0x16ec   : > { %p2580_p10 = pneg %p2579_p6 }
0x16ed   : > { %p2586_p1 = por %p2585_p11, %p2584_p8 }
0x16ef   : > { %p2587_p3 = pnand %p2586_p1, %p2580_p10 }
0x16f1   : > { %2590 = shalt.err (!%p2587_p3)
}
0x16f2   : > { %2323 = dma.vmem_to_hbm [thread:$0]  (%p3331_p0), %s3249_s15, 128, %s3247_s24, %s1779_s11  }
0x16f3 PF: > { %s1804_s17 = sand.u32 1, %s2621_s27   ;;  %p3332_p7 = scmp.ne.s32.totalorder %s3313_s12, 0 }
0x16f4   : > { %p3333_p9 = scmp.ge.s32.totalorder %s2633_s30, 2  ;;  %s1805_s25 = scalar_lea.sflag [#allocation4], %s1804_s17 }
0x16f6   : > { %p2337_p12 = pnand %p3333_p9, %p3332_p7 }
0x16f8   : > { %2616 = dma.done.wait (!%p2337_p12), %s1805_s25, 128  }
0x16f9   : > { %2618 = vsyncadd (!%p2337_p12), %s1805_s25, 4294967168  ;;  %p22_p2 = scmp.ge.s32.totalorder %s2807_s20, 4   ;;  %s3334_s27 = smov %s2625_s28 }
0x16fa   : > { %s3335_s28 = smov %s2629_s29  ;;  %s3336_s29 = smov %s2823_s23 }
0x16fb   : > { %s3337_s30 = smov %s2807_s20  ;;  %24 = sbr.rel (!%p22_p2) target bundleno = 6 (0x6), region = 110 }
0x1702   :  { %1810 = vsyncpa [#allocation3], 1 }
0x1703   :  { %1812 = vsyncpa [#allocation3 + $0x1], 1 }
0x1704   :  { %1813 = vsyncpa [#allocation6], 1 }
0x1705   :  { %1814 = vsyncpa [#allocation4], 1 }
0x1706   :  { %1816 = vsyncpa [#allocation4 + $0x1], 1 }

</bundles_post_ra>
